<compile_context>
chip_gen: v7x
topology: tpu7x:2x2x1
jax: 0.10.0
libtpu: 0.0.40
codegen_flags: <defaults>
</compile_context>

<pallas_src>
import functools
import math

import jax
import jax.numpy as jnp
from jax import lax
from jax.experimental import pallas as pl
from jax.experimental.pallas import tpu as pltpu

BN_EPS = 1e-5
BN_SCALE = 1.0 / math.sqrt(1.0 + BN_EPS)   # eval BatchNorm: mean=0, var=1, w=1, b=0
LANE = 128
SUB = 8                                    # sublane-aligned scalar-partial blocks
VMEM_LIMIT = 64 * 1024 * 1024              # fits v5e/v6e/v7x physical VMEM

_VSPEC = pl.BlockSpec(memory_space=pltpu.MemorySpace.VMEM)


def _cparams(*semantics):
    return pltpu.CompilerParams(
        dimension_semantics=semantics if semantics else None,
        vmem_limit_bytes=VMEM_LIMIT)


def _tile(n, cap):
    """Largest tile <= cap that divides n (falls back to a proper divisor)."""
    if n <= cap:
        return n
    if n % cap == 0:
        return cap
    # TODO(synk): pad + mask ragged tiles instead of shrinking the tile.
    return max(d for d in range(1, cap + 1) if n % d == 0)


def _softplus(y):
    return jnp.log(1.0 + jnp.exp(-jnp.abs(y))) + jnp.maximum(y, 0.0)


# ----------------------------- kernels ------------------------------------ #

def _encoder_kernel(x_ref, w11_ref, b11_ref, w12_ref, b12_ref,
                    w21_ref, b21_ref, w22_ref, b22_ref,
                    pmu_ref, pvar_ref,
                    out_ref, kl_ref, *, num_topic, apply_softmax):
    """Fused encoder for one row tile: softplus Linears, BN'd heads, KL, softmax.

    Weights are bf16 (pre-cast in the wrapper); activations cast to bf16 only at
    the MXU inputs; element-wise math stays f32.
    """
    x = x_ref[...].astype(jnp.bfloat16)
    h = _softplus(jnp.dot(x, w11_ref[...], preferred_element_type=jnp.float32)
                  + b11_ref[...])
    h = _softplus(jnp.dot(h.astype(jnp.bfloat16), w12_ref[...],
                          preferred_element_type=jnp.float32) + b12_ref[...])
    hb = h.astype(jnp.bfloat16)
    # TODO(synk): fuse fc21/fc22 into one [H, 2K] matmul and lane-pad K to a
    # multiple of 128 (masked softmax/KL) for lane-dense stores at tiny K.
    mu = (jnp.dot(hb, w21_ref[...], preferred_element_type=jnp.float32)
          + b21_ref[...]) * BN_SCALE
    logvar = (jnp.dot(hb, w22_ref[...], preferred_element_type=jnp.float32)
              + b22_ref[...]) * BN_SCALE

    # KL(q || prior), summed over this row tile (row-mean taken in the wrapper).
    pmu = pmu_ref[...]
    pvar = pvar_ref[...]
    var = jnp.exp(logvar)
    diff = mu - pmu
    kl_rows = 0.5 * (jnp.sum(var / pvar + diff * diff / pvar
                             + jnp.log(pvar) - logvar,
                             axis=-1, keepdims=True) - num_topic)
    kl_ref[...] = jnp.zeros(kl_ref.shape, jnp.float32) + jnp.sum(kl_rows)

    if apply_softmax:
        m = mu - jnp.max(mu, axis=-1, keepdims=True)
        e = jnp.exp(m)
        out_ref[...] = e / jnp.sum(e, axis=-1, keepdims=True)
    else:
        out_ref[...] = mu


def _beta_kernel(t_ref, wT_ref, *out_refs, beta_temp, sinkhorn_alpha, need_ecr):
    """One V tile: pairwise distances, beta = softmax(-dist/T, axis=0),
    and (only if ECR is on) dist and Kexp = exp(-dist*alpha)."""
    t = t_ref[...]                                     # [K, E] f32 (resident)
    wT = wT_ref[...]                                   # [E, Vt] f32
    t_norm = jnp.sum(t * t, axis=1, keepdims=True)     # [K, 1]
    w_norm = jnp.sum(wT * wT, axis=0, keepdims=True)   # [1, Vt]
    dist = t_norm + w_norm - 2.0 * jnp.dot(
        t.astype(jnp.bfloat16), wT.astype(jnp.bfloat16),
        preferred_element_type=jnp.float32)
    logits = -dist / beta_temp
    logits = logits - jnp.max(logits, axis=0, keepdims=True)   # softmax over topics
    e = jnp.exp(logits)
    out_refs[0][...] = e / jnp.sum(e, axis=0, keepdims=True)
    if need_ecr:                                        # static python choice
        out_refs[1][...] = dist
        out_refs[2][...] = jnp.exp(-dist * sinkhorn_alpha)


def _subdoc_recon_kernel(z_ref, theta_ref, beta_ref, xaug_ref, out_ref):
    """One block of docs*S sub-document rows, fully 2D:
       theta_ds softmax -> decoder matmul + eval-BN -> log-softmax -> partial NLL.
    """
    t = z_ref[...] * theta_ref[...]                     # [R, K]
    t = t - jnp.max(t, axis=-1, keepdims=True)
    e = jnp.exp(t)
    theta_ds = (e / jnp.sum(e, axis=-1, keepdims=True)).astype(jnp.bfloat16)

    logits = jnp.dot(theta_ds, beta_ref[...],
                     preferred_element_type=jnp.float32) * BN_SCALE   # [R, V]
    # log-softmax rewrite (replaces softmax + log(p + 1e-10); differs from the
    # reference only at the ~1e-10 probability level).
    m = jnp.max(logits, axis=-1, keepdims=True)
    lse = jnp.log(jnp.sum(jnp.exp(logits - m), axis=-1, keepdims=True)) + m
    # -x_aug * log_softmax = x_aug * (lse - logits)
    part = jnp.sum(xaug_ref[...] * (lse - logits))
    out_ref[...] = jnp.zeros(out_ref.shape, jnp.float32) + part


def _sinkhorn_step_kernel(k_ref, u_ref, u_out_ref, vT_out_ref,
                          *, inv_rows, inv_cols, eps):
    """One Sinkhorn iteration with Kexp streamed once:
       v = b / (K^T u + eps) ; u = a / (K v + eps)."""
    Kmat = k_ref[...]                                   # [K, V]
    u = u_ref[...]                                      # [K, 1]
    ktu = jnp.sum(Kmat * u, axis=0, keepdims=True)      # [1, V]  (= K^T u)
    vT = inv_cols / (ktu + eps)
    kv = jnp.sum(Kmat * vT, axis=1, keepdims=True)      # [K, 1]  (= K v)
    u_out_ref[...] = inv_rows / (kv + eps)
    vT_out_ref[...] = vT


# --------------------------- kernel wrappers ------------------------------- #

def fused_encoder(x, params, prefix, pmu, pvar, num_topic, apply_softmax,
                  max_row_tile=256):
    w11, b11 = params[prefix + "fc11"]
    w12, b12 = params[prefix + "fc12"]
    w21, b21 = params[prefix + "fc21"]
    w22, b22 = params[prefix + "fc22"]
    R, V = x.shape
    H = w11.shape[1]
    rt = _tile(R, max_row_tile)
    nt = R // rt

    # Pre-cast matmul weights to bf16 once; biases / priors stay f32.
    w11b, w12b = w11.astype(jnp.bfloat16), w12.astype(jnp.bfloat16)
    w21b, w22b = w21.astype(jnp.bfloat16), w22.astype(jnp.bfloat16)

    def resident(shape):
        return pl.BlockSpec(shape, lambda i, _s=shape: tuple(0 for _ in _s))

    kern = functools.partial(_encoder_kernel, num_topic=float(num_topic),
                             apply_softmax=apply_softmax)
    # TODO(synk): at realistic vocab sizes additionally tile the fc11
    # contraction over V (second "arbitrary" grid axis, VMEM accumulator) so
    # w11 [V, H] never has to be fully VMEM-resident.
    out, kl = pl.pallas_call(
        kern,
        out_shape=(jax.ShapeDtypeStruct((R, num_topic), jnp.float32),
                   jax.ShapeDtypeStruct((nt, SUB, LANE), jnp.float32)),
        grid=(nt,),
        in_specs=[
            pl.BlockSpec((rt, V), lambda i: (i, 0)),           # x row tile
            resident((V, H)), resident((1, H)),                # fc11
            resident((H, H)), resident((1, H)),                # fc12
            resident((H, num_topic)), resident((1, num_topic)),  # fc21
            resident((H, num_topic)), resident((1, num_topic)),  # fc22
            resident((1, num_topic)), resident((1, num_topic)),  # priors
        ],
        out_specs=(pl.BlockSpec((rt, num_topic), lambda i: (i, 0)),
                   pl.BlockSpec((1, SUB, LANE), lambda i: (i, 0, 0))),
        compiler_params=_cparams("parallel"),
    )(x, w11b, b11, w12b, b12, w21b, b21, w22b, b22, pmu, pvar)
    return out, jnp.sum(kl[:, 0, 0]) / R


def beta_and_cost(topic_emb, word_emb, beta_temp, sinkhorn_alpha, need_ecr,
                  max_v_tile=2048):
    K, E = topic_emb.shape
    V = word_emb.shape[0]
    vt = _tile(V, max_v_tile)
    nv = V // vt
    wT = word_emb.T                                     # [E, V]
    n_out = 3 if need_ecr else 1
    kern = functools.partial(_beta_kernel, beta_temp=beta_temp,
                             sinkhorn_alpha=sinkhorn_alpha, need_ecr=need_ecr)
    outs = pl.pallas_call(
        kern,
        out_shape=tuple(jax.ShapeDtypeStruct((K, V), jnp.float32)
                        for _ in range(n_out)),
        grid=(nv,),
        in_specs=[pl.BlockSpec((K, E), lambda j: (0, 0)),      # topics resident
                  pl.BlockSpec((E, vt), lambda j: (0, j))],    # word tile
        out_specs=tuple(pl.BlockSpec((K, vt), lambda j: (0, j))
                        for _ in range(n_out)),
        compiler_params=_cparams("parallel"),
    )(topic_emb, wT)
    if need_ecr:
        return outs[0], outs[1], outs[2]
    return outs[0], None, None


def subdoc_recon_loss(z_e, theta, beta, x_sub, x, augment_coef,
                      max_doc_block=64):
    """nll = mean over (B,S) rows of -(x_aug * log softmax(BN(theta_ds@beta))).sum(-1)."""
    B, S, V = x_sub.shape
    K = theta.shape[1]
    db = _tile(B, max_doc_block)
    nb = B // db
    rows = db * S

    # Flatten everything to 2D on the wrapper side (cheap XLA elementwise ops)
    # so the kernel stays reshape-free and the decoder matmul sees db*S rows.
    theta_rep = jnp.repeat(theta, S, axis=0)                       # [B*S, K]
    x_aug = (x_sub + augment_coef * x[:, None, :]).reshape(B * S, V)
    beta_b = beta.astype(jnp.bfloat16)                             # resident bf16

    # TODO(synk): at realistic vocab sizes additionally tile over V with an
    # online (flash-style) log-sum-exp so beta / x_aug tiles fit VMEM, and fuse
    # the x_aug construction back into the kernel to avoid its HBM round-trip.
    parts = pl.pallas_call(
        _subdoc_recon_kernel,
        out_shape=jax.ShapeDtypeStruct((nb, SUB, LANE), jnp.float32),
        grid=(nb,),
        in_specs=[
            pl.BlockSpec((rows, K), lambda b: (b, 0)),   # z_e rows
            pl.BlockSpec((rows, K), lambda b: (b, 0)),   # theta per row
            pl.BlockSpec((K, V), lambda b: (0, 0)),      # beta resident (bf16)
            pl.BlockSpec((rows, V), lambda b: (b, 0)),   # x_aug rows
        ],
        out_specs=pl.BlockSpec((1, SUB, LANE), lambda b: (b, 0, 0)),
        compiler_params=_cparams("parallel"),
    )(z_e, theta_rep, beta_b, x_aug)
    return jnp.sum(parts[:, 0, 0]) / (B * S)


def ecr_loss(M, Kmat, cfg):
    """Sinkhorn OT loss; per-iteration matvecs fused into one Pallas kernel."""
    weight = cfg["weight_loss_ECR"]
    max_iter = cfg["sinkhorn_max_iter"]
    stop_thr, eps = 0.005, 1e-16
    Kd, Vd = M.shape
    inv_rows, inv_cols = 1.0 / Kd, 1.0 / Vd
    u0 = jnp.full((Kd, 1), inv_rows, jnp.float32)

    step = pl.pallas_call(
        functools.partial(_sinkhorn_step_kernel, inv_rows=inv_rows,
                          inv_cols=inv_cols, eps=eps),
        out_shape=(jax.ShapeDtypeStruct((Kd, 1), jnp.float32),
                   jax.ShapeDtypeStruct((1, Vd), jnp.float32)),
        in_specs=[_VSPEC, _VSPEC],
        out_specs=(_VSPEC, _VSPEC),
        compiler_params=_cparams(),
    )
    # TODO(synk): for realistic K*V, run the whole Sinkhorn loop inside one
    # kernel with Kexp resident in VMEM (bf16, V-tiled) instead of re-streaming
    # Kexp from HBM every iteration.

    def cond(state):
        _, _, err, cpt = state
        return jnp.logical_and(err > stop_thr, cpt < max_iter)

    def body(state):
        u, vT, err, cpt = state
        u_new, vT_new = step(Kmat, u)
        cpt_new = cpt + 1

        def check(_):
            ktu = jnp.dot(u_new.T, Kmat)                  # rare (every 50 iters)
            return jnp.sum(jnp.abs(vT_new * ktu - inv_cols))

        err_new = lax.cond(cpt_new % 50 == 1, check, lambda _: err, operand=None)
        return (u_new, vT_new, err_new, cpt_new)

    u, vT, _, _ = lax.while_loop(
        cond, body,
        (u0, jnp.zeros((1, Vd), jnp.float32),
         jnp.array(1.0, jnp.float32), jnp.array(0, jnp.int32)))
    # Final transport contraction: memory-bound elementwise reduce -> plain XLA.
    return jnp.sum(u * (Kmat * vT) * M) * weight


# ------------------------------- model ------------------------------------- #

def init_params(key, cfg):
    V, H, K, E = cfg["vocab_size"], cfg["en1_units"], cfg["num_topic"], cfg["embed_size"]
    keys = jax.random.split(key, 12)

    def lin(k, fin, fout):
        kw, kb = jax.random.split(k)
        w = jax.random.normal(kw, (fin, fout), jnp.float32) / math.sqrt(fin)
        b = 0.01 * jax.random.normal(kb, (1, fout), jnp.float32)
        return w, b

    def l2norm(x):
        n = jnp.sqrt(jnp.sum(x * x, axis=1, keepdims=True))
        return x / jnp.maximum(n, 1e-12)

    params = {
        "fc11": lin(keys[0], V, H), "fc12": lin(keys[1], H, H),
        "fc21": lin(keys[2], H, K), "fc22": lin(keys[3], H, K),
        "sub_fc11": lin(keys[4], V, H), "sub_fc12": lin(keys[5], H, H),
        "sub_fc21": lin(keys[6], H, K), "sub_fc22": lin(keys[7], H, K),
    }
    we = jax.random.truncated_normal(keys[8], -2.0, 2.0, (V, E), jnp.float32)
    params["word_embeddings"] = l2norm(we)
    te = 0.1 * jax.random.truncated_normal(keys[9], -2.0, 2.0, (K, E), jnp.float32)
    params["topic_embeddings"] = l2norm(te)
    # priors derived from a = ones((1, K)) exactly as in the torch __init__
    params["mu2"] = jnp.zeros((1, K), jnp.float32)
    params["var2"] = jnp.full((1, K), (1.0 - 2.0 / K) + (1.0 / (K * K)) * K, jnp.float32)
    params["local_adapter_mu"] = jnp.ones((1, K), jnp.float32)
    params["local_adapter_var"] = jnp.full((1, K), cfg["adapter_alpha"], jnp.float32)
    # cluster_centers exist in the module but are unused in forward
    params["cluster_centers"] = jax.random.normal(
        keys[10], (cfg["num_cluster"], K), jnp.float32)
    return params


def tmsd6_forward(params, cfg, x, x_sub):
    B, V = x.shape
    S = x_sub.shape[1]
    K = cfg["num_topic"]

    # ---- document encoder (row-tiled, weights resident, KL partials) ----
    theta, loss_KL = fused_encoder(
        x, params, "", params["mu2"], params["var2"], K, apply_softmax=True)

    # ---- beta / cost matrix (+ Kexp only when ECR is on), V-tiled ----
    need_ecr = cfg["weight_loss_ECR"] > 1e-6
    beta, dist, kmat = beta_and_cost(
        params["topic_embeddings"], params["word_embeddings"],
        cfg["beta_temp"], cfg["sinkhorn_alpha"], need_ecr)

    # NOTE: the reference forward computes recon_doc_loss but never folds it
    # into any returned value, so it is skipped here.

    # ---- sub-document encoder (same fused, row-tiled kernel) ----
    flat = x_sub.reshape(B * S, V)
    z_e, kl_adapter = fused_encoder(
        flat, params, "sub_", params["local_adapter_mu"],
        params["local_adapter_var"], K, apply_softmax=False)

    # ---- doc-batched theta_ds / decoder log-softmax / NLL partials ----
    nll = subdoc_recon_loss(z_e, theta, beta, x_sub, x, cfg["augment_coef"])

    loss_TM = nll + loss_KL + kl_adapter
    ot_loss = ecr_loss(dist, kmat, cfg) if need_ecr else jnp.float32(0.0)
    loss = loss_TM + ot_loss
    return {"loss": loss, "loss_TM": loss_TM, "ot_loss": ot_loss}


# -------------------------------- main ------------------------------------- #

if __name__ == "__main__":
    cfg = dict(
        vocab_size=64, en1_units=32, num_topic=16, embed_size=32,
        num_cluster=4, beta_temp=0.2, tau=1.0, adapter_alpha=2.0,
        augment_coef=0.5, dropout=0.0,
        weight_loss_ECR=1.0, sinkhorn_alpha=20.0, sinkhorn_max_iter=100,
    )
    key = jax.random.PRNGKey(0)
    kp, kx, ks = jax.random.split(key, 3)
    params = init_params(kp, cfg)

    B, S, V = 4, 2, cfg["vocab_size"]
    x = 2.0 * jax.random.uniform(kx, (B, V), jnp.float32)          # BoW-like counts
    x_sub = 2.0 * jax.random.uniform(ks, (B, S, V), jnp.float32)

    fwd = jax.jit(lambda p, a, b_: tmsd6_forward(p, cfg, a, b_))
    out = fwd(params, x, x_sub)
    out = jax.block_until_ready(out)

    for k in ("loss", "loss_TM", "ot_loss"):
        v = out[k]
        assert v.shape == () and jnp.isfinite(v), (k, v)
    print("KERNEL_OK")
</pallas_src>

<mosaic_0001>
module attributes {stable_mosaic.version = 11 : i64} {
  func.func @_encoder_kernel(%arg0: i32, %arg1: memref<8x64xf32, #tpu.memory_space<vmem>>, %arg2: memref<64x32xbf16, #tpu.memory_space<vmem>>, %arg3: memref<1x32xf32, #tpu.memory_space<vmem>>, %arg4: memref<32x32xbf16, #tpu.memory_space<vmem>>, %arg5: memref<1x32xf32, #tpu.memory_space<vmem>>, %arg6: memref<32x16xbf16, #tpu.memory_space<vmem>>, %arg7: memref<1x16xf32, #tpu.memory_space<vmem>>, %arg8: memref<32x16xbf16, #tpu.memory_space<vmem>>, %arg9: memref<1x16xf32, #tpu.memory_space<vmem>>, %arg10: memref<1x16xf32, #tpu.memory_space<vmem>>, %arg11: memref<1x16xf32, #tpu.memory_space<vmem>>, %arg12: memref<8x16xf32, #tpu.memory_space<vmem>>, %arg13: memref<1x8x128xf32, #tpu.memory_space<vmem>>) attributes {dimension_semantics = [#tpu.dimension_semantics<parallel>], iteration_bounds = array<i64: 1>, scalar_prefetch = 0 : i64, scratch_operands = 0 : i64, tpu.core_type = #tpu.core_type<tc>, window_params = [{transform_indices = @transform_0, window_bounds = array<i64: 8, 64>}, {pipeline_mode = #tpu.pipeline_mode<synchronous>, transform_indices = @transform_1, window_bounds = array<i64: 64, 32>}, {pipeline_mode = #tpu.pipeline_mode<synchronous>, transform_indices = @transform_2, window_bounds = array<i64: 1, 32>}, {pipeline_mode = #tpu.pipeline_mode<synchronous>, transform_indices = @transform_3, window_bounds = array<i64: 32, 32>}, {pipeline_mode = #tpu.pipeline_mode<synchronous>, transform_indices = @transform_4, window_bounds = array<i64: 1, 32>}, {pipeline_mode = #tpu.pipeline_mode<synchronous>, transform_indices = @transform_5, window_bounds = array<i64: 32, 16>}, {pipeline_mode = #tpu.pipeline_mode<synchronous>, transform_indices = @transform_6, window_bounds = array<i64: 1, 16>}, {pipeline_mode = #tpu.pipeline_mode<synchronous>, transform_indices = @transform_7, window_bounds = array<i64: 32, 16>}, {pipeline_mode = #tpu.pipeline_mode<synchronous>, transform_indices = @transform_8, window_bounds = array<i64: 1, 16>}, {pipeline_mode = #tpu.pipeline_mode<synchronous>, transform_indices = @transform_9, window_bounds = array<i64: 1, 16>}, {pipeline_mode = #tpu.pipeline_mode<synchronous>, transform_indices = @transform_10, window_bounds = array<i64: 1, 16>}, {transform_indices = @transform_11, window_bounds = array<i64: 8, 16>}, {transform_indices = @transform_12, window_bounds = array<i64: 1, 8, 128>}]} {
    %c0 = arith.constant 0 : index
    %c0_0 = arith.constant 0 : index
    %0 = vector.load %arg1[%c0, %c0_0] : memref<8x64xf32, #tpu.memory_space<vmem>>, vector<8x64xf32>
    %1 = arith.truncf %0 : vector<8x64xf32> to vector<8x64xbf16>
    %c0_1 = arith.constant 0 : index
    %c0_2 = arith.constant 0 : index
    %2 = vector.load %arg2[%c0_1, %c0_2] : memref<64x32xbf16, #tpu.memory_space<vmem>>, vector<64x32xbf16>
    %cst = arith.constant dense<0.000000e+00> : vector<8x32xf32>
    %3 = tpu.matmul %1, %2, %cst {dimension_numbers = #tpu.dot_dimension_numbers<[1], [0], [0], [1], [0, 0, 1, 1], [], []>} : vector<8x64xbf16>, vector<64x32xbf16>, vector<8x32xf32> -> vector<8x32xf32>
    %c0_3 = arith.constant 0 : index
    %c0_4 = arith.constant 0 : index
    %4 = vector.load %arg3[%c0_3, %c0_4] : memref<1x32xf32, #tpu.memory_space<vmem>>, vector<1x32xf32>
    %5 = vector.broadcast %4 : vector<1x32xf32> to vector<8x32xf32>
    %6 = arith.addf %3, %5 : vector<8x32xf32>
    %7 = math.absf %6 : vector<8x32xf32>
    %cst_5 = arith.constant 0.000000e+00 : f32
    %8 = vector.broadcast %cst_5 : f32 to vector<8x32xf32>
    %9 = arith.subf %8, %7 : vector<8x32xf32>
    %10 = math.exp %9 : vector<8x32xf32>
    %cst_6 = arith.constant 1.000000e+00 : f32
    %11 = vector.broadcast %cst_6 : f32 to vector<8x32xf32>
    %12 = arith.addf %11, %10 : vector<8x32xf32>
    %13 = math.log %12 : vector<8x32xf32>
    %cst_7 = arith.constant 0.000000e+00 : f32
    %14 = vector.broadcast %cst_7 : f32 to vector<8x32xf32>
    %15 = arith.maximumf %6, %14 : vector<8x32xf32>
    %16 = arith.addf %13, %15 : vector<8x32xf32>
    %17 = arith.truncf %16 : vector<8x32xf32> to vector<8x32xbf16>
    %c0_8 = arith.constant 0 : index
    %c0_9 = arith.constant 0 : index
    %18 = vector.load %arg4[%c0_8, %c0_9] : memref<32x32xbf16, #tpu.memory_space<vmem>>, vector<32x32xbf16>
    %cst_10 = arith.constant dense<0.000000e+00> : vector<8x32xf32>
    %19 = tpu.matmul %17, %18, %cst_10 {dimension_numbers = #tpu.dot_dimension_numbers<[1], [0], [0], [1], [0, 0, 1, 1], [], []>} : vector<8x32xbf16>, vector<32x32xbf16>, vector<8x32xf32> -> vector<8x32xf32>
    %c0_11 = arith.constant 0 : index
    %c0_12 = arith.constant 0 : index
    %20 = vector.load %arg5[%c0_11, %c0_12] : memref<1x32xf32, #tpu.memory_space<vmem>>, vector<1x32xf32>
    %21 = vector.broadcast %20 : vector<1x32xf32> to vector<8x32xf32>
    %22 = arith.addf %19, %21 : vector<8x32xf32>
    %23 = math.absf %22 : vector<8x32xf32>
    %cst_13 = arith.constant 0.000000e+00 : f32
    %24 = vector.broadcast %cst_13 : f32 to vector<8x32xf32>
    %25 = arith.subf %24, %23 : vector<8x32xf32>
    %26 = math.exp %25 : vector<8x32xf32>
    %cst_14 = arith.constant 1.000000e+00 : f32
    %27 = vector.broadcast %cst_14 : f32 to vector<8x32xf32>
    %28 = arith.addf %27, %26 : vector<8x32xf32>
    %29 = math.log %28 : vector<8x32xf32>
    %cst_15 = arith.constant 0.000000e+00 : f32
    %30 = vector.broadcast %cst_15 : f32 to vector<8x32xf32>
    %31 = arith.maximumf %22, %30 : vector<8x32xf32>
    %32 = arith.addf %29, %31 : vector<8x32xf32>
    %33 = arith.truncf %32 : vector<8x32xf32> to vector<8x32xbf16>
    %c0_16 = arith.constant 0 : index
    %c0_17 = arith.constant 0 : index
    %34 = vector.load %arg6[%c0_16, %c0_17] : memref<32x16xbf16, #tpu.memory_space<vmem>>, vector<32x16xbf16>
    %cst_18 = arith.constant dense<0.000000e+00> : vector<8x16xf32>
    %35 = tpu.matmul %33, %34, %cst_18 {dimension_numbers = #tpu.dot_dimension_numbers<[1], [0], [0], [1], [0, 0, 1, 1], [], []>} : vector<8x32xbf16>, vector<32x16xbf16>, vector<8x16xf32> -> vector<8x16xf32>
    %c0_19 = arith.constant 0 : index
    %c0_20 = arith.constant 0 : index
    %36 = vector.load %arg7[%c0_19, %c0_20] : memref<1x16xf32, #tpu.memory_space<vmem>>, vector<1x16xf32>
    %37 = vector.broadcast %36 : vector<1x16xf32> to vector<8x16xf32>
    %38 = arith.addf %35, %37 : vector<8x16xf32>
    %cst_21 = arith.constant 0.999994993 : f32
    %39 = vector.broadcast %cst_21 : f32 to vector<8x16xf32>
    %40 = arith.mulf %38, %39 : vector<8x16xf32>
    %c0_22 = arith.constant 0 : index
    %c0_23 = arith.constant 0 : index
    %41 = vector.load %arg8[%c0_22, %c0_23] : memref<32x16xbf16, #tpu.memory_space<vmem>>, vector<32x16xbf16>
    %cst_24 = arith.constant dense<0.000000e+00> : vector<8x16xf32>
    %42 = tpu.matmul %33, %41, %cst_24 {dimension_numbers = #tpu.dot_dimension_numbers<[1], [0], [0], [1], [0, 0, 1, 1], [], []>} : vector<8x32xbf16>, vector<32x16xbf16>, vector<8x16xf32> -> vector<8x16xf32>
    %c0_25 = arith.constant 0 : index
    %c0_26 = arith.constant 0 : index
    %43 = vector.load %arg9[%c0_25, %c0_26] : memref<1x16xf32, #tpu.memory_space<vmem>>, vector<1x16xf32>
    %44 = vector.broadcast %43 : vector<1x16xf32> to vector<8x16xf32>
    %45 = arith.addf %42, %44 : vector<8x16xf32>
    %cst_27 = arith.constant 0.999994993 : f32
    %46 = vector.broadcast %cst_27 : f32 to vector<8x16xf32>
    %47 = arith.mulf %45, %46 : vector<8x16xf32>
    %c0_28 = arith.constant 0 : index
    %c0_29 = arith.constant 0 : index
    %48 = vector.load %arg10[%c0_28, %c0_29] : memref<1x16xf32, #tpu.memory_space<vmem>>, vector<1x16xf32>
    %c0_30 = arith.constant 0 : index
    %c0_31 = arith.constant 0 : index
    %49 = vector.load %arg11[%c0_30, %c0_31] : memref<1x16xf32, #tpu.memory_space<vmem>>, vector<1x16xf32>
    %50 = math.exp %47 : vector<8x16xf32>
    %51 = vector.broadcast %48 : vector<1x16xf32> to vector<8x16xf32>
    %52 = arith.subf %40, %51 : vector<8x16xf32>
    %53 = vector.broadcast %49 : vector<1x16xf32> to vector<8x16xf32>
    %54 = arith.divf %50, %53 : vector<8x16xf32>
    %55 = arith.mulf %52, %52 : vector<8x16xf32>
    %56 = vector.broadcast %49 : vector<1x16xf32> to vector<8x16xf32>
    %57 = arith.divf %55, %56 : vector<8x16xf32>
    %58 = arith.addf %54, %57 : vector<8x16xf32>
    %59 = math.log %49 : vector<1x16xf32>
    %60 = vector.broadcast %59 : vector<1x16xf32> to vector<8x16xf32>
    %61 = arith.addf %58, %60 : vector<8x16xf32>
    %62 = arith.subf %61, %47 : vector<8x16xf32>
    %cst_32 = arith.constant dense<0.000000e+00> : vector<8xf32>
    %63 = vector.multi_reduction <add>, %62, %cst_32 [1] : vector<8x16xf32> to vector<8xf32>
    %64 = vector.shape_cast %63 : vector<8xf32> to vector<8x1xf32>
    %cst_33 = arith.constant 1.600000e+01 : f32
    %65 = vector.broadcast %cst_33 : f32 to vector<8x1xf32>
    %66 = arith.subf %64, %65 : vector<8x1xf32>
    %cst_34 = arith.constant 5.000000e-01 : f32
    %67 = vector.broadcast %cst_34 : f32 to vector<8x1xf32>
    %68 = arith.mulf %67, %66 : vector<8x1xf32>
    %cst_35 = arith.constant 0.000000e+00 : f32
    %69 = vector.broadcast %cst_35 : f32 to vector<1x8x128xf32>
    %70 = vector.shape_cast %68 : vector<8x1xf32> to vector<1x8x1xf32>
    %cst_36 = arith.constant dense<0.000000e+00> : vector<1xf32>
    %71 = vector.multi_reduction <add>, %70, %cst_36 [1, 2] : vector<1x8x1xf32> to vector<1xf32>
    %72 = vector.shape_cast %71 : vector<1xf32> to vector<1x1x1xf32>
    %73 = vector.extract %72[0, 0, 0] : f32 from vector<1x1x1xf32>
    %74 = vector.broadcast %73 : f32 to vector<1x8x128xf32>
    %75 = arith.addf %69, %74 : vector<1x8x128xf32>
    %c0_37 = arith.constant 0 : index
    %c0_38 = arith.constant 0 : index
    %c0_39 = arith.constant 0 : index
    %76 = vector.load %arg13[%c0_37, %c0_38, %c0_39] : memref<1x8x128xf32, #tpu.memory_space<vmem>>, vector<1x8x128xf32>
    tpu.vector_store %arg13[%c0_37, %c0_38, %c0_39], %75 {strides = array<i32>} : memref<1x8x128xf32, #tpu.memory_space<vmem>>, vector<1x8x128xf32>,
    %c0_40 = arith.constant 0 : index
    %c0_41 = arith.constant 0 : index
    %77 = vector.load %arg12[%c0_40, %c0_41] : memref<8x16xf32, #tpu.memory_space<vmem>>, vector<8x16xf32>
    tpu.vector_store %arg12[%c0_40, %c0_41], %40 {strides = array<i32>} : memref<8x16xf32, #tpu.memory_space<vmem>>, vector<8x16xf32>,
    return
  }
  func.func @transform_0(%arg0: i32) -> (i32, i32) {
    %c0_i32 = arith.constant 0 : i32
    %c0_i32_0 = arith.constant 0 : i32
    return %arg0, %c0_i32 : i32, i32
  }
  func.func @transform_1(%arg0: i32) -> (i32, i32) {
    %c0_i32 = arith.constant 0 : i32
    %c0_i32_0 = arith.constant 0 : i32
    %c0_i32_1 = arith.constant 0 : i32
    return %c0_i32, %c0_i32_0 : i32, i32
  }
  func.func @transform_2(%arg0: i32) -> (i32, i32) {
    %c0_i32 = arith.constant 0 : i32
    %c0_i32_0 = arith.constant 0 : i32
    %c0_i32_1 = arith.constant 0 : i32
    return %c0_i32, %c0_i32_0 : i32, i32
  }
  func.func @transform_3(%arg0: i32) -> (i32, i32) {
    %c0_i32 = arith.constant 0 : i32
    %c0_i32_0 = arith.constant 0 : i32
    %c0_i32_1 = arith.constant 0 : i32
    return %c0_i32, %c0_i32_0 : i32, i32
  }
  func.func @transform_4(%arg0: i32) -> (i32, i32) {
    %c0_i32 = arith.constant 0 : i32
    %c0_i32_0 = arith.constant 0 : i32
    %c0_i32_1 = arith.constant 0 : i32
    return %c0_i32, %c0_i32_0 : i32, i32
  }
  func.func @transform_5(%arg0: i32) -> (i32, i32) {
    %c0_i32 = arith.constant 0 : i32
    %c0_i32_0 = arith.constant 0 : i32
    %c0_i32_1 = arith.constant 0 : i32
    return %c0_i32, %c0_i32_0 : i32, i32
  }
  func.func @transform_6(%arg0: i32) -> (i32, i32) {
    %c0_i32 = arith.constant 0 : i32
    %c0_i32_0 = arith.constant 0 : i32
    %c0_i32_1 = arith.constant 0 : i32
    return %c0_i32, %c0_i32_0 : i32, i32
  }
  func.func @transform_7(%arg0: i32) -> (i32, i32) {
    %c0_i32 = arith.constant 0 : i32
    %c0_i32_0 = arith.constant 0 : i32
    %c0_i32_1 = arith.constant 0 : i32
    return %c0_i32, %c0_i32_0 : i32, i32
  }
  func.func @transform_8(%arg0: i32) -> (i32, i32) {
    %c0_i32 = arith.constant 0 : i32
    %c0_i32_0 = arith.constant 0 : i32
    %c0_i32_1 = arith.constant 0 : i32
    return %c0_i32, %c0_i32_0 : i32, i32
  }
  func.func @transform_9(%arg0: i32) -> (i32, i32) {
    %c0_i32 = arith.constant 0 : i32
    %c0_i32_0 = arith.constant 0 : i32
    %c0_i32_1 = arith.constant 0 : i32
    return %c0_i32, %c0_i32_0 : i32, i32
  }
  func.func @transform_10(%arg0: i32) -> (i32, i32) {
    %c0_i32 = arith.constant 0 : i32
    %c0_i32_0 = arith.constant 0 : i32
    %c0_i32_1 = arith.constant 0 : i32
    return %c0_i32, %c0_i32_0 : i32, i32
  }
  func.func @transform_11(%arg0: i32) -> (i32, i32) {
    %c0_i32 = arith.constant 0 : i32
    %c0_i32_0 = arith.constant 0 : i32
    return %arg0, %c0_i32 : i32, i32
  }
  func.func @transform_12(%arg0: i32) -> (i32, i32, i32) {
    %c0_i32 = arith.constant 0 : i32
    %c0_i32_0 = arith.constant 0 : i32
    %c0_i32_1 = arith.constant 0 : i32
    return %arg0, %c0_i32, %c0_i32_0 : i32, i32, i32
  }
}

module attributes {stable_mosaic.version = 11 : i64} {
  func.func @_encoder_kernel(%arg0: i32, %arg1: memref<4x64xf32, #tpu.memory_space<vmem>>, %arg2: memref<64x32xbf16, #tpu.memory_space<vmem>>, %arg3: memref<1x32xf32, #tpu.memory_space<vmem>>, %arg4: memref<32x32xbf16, #tpu.memory_space<vmem>>, %arg5: memref<1x32xf32, #tpu.memory_space<vmem>>, %arg6: memref<32x16xbf16, #tpu.memory_space<vmem>>, %arg7: memref<1x16xf32, #tpu.memory_space<vmem>>, %arg8: memref<32x16xbf16, #tpu.memory_space<vmem>>, %arg9: memref<1x16xf32, #tpu.memory_space<vmem>>, %arg10: memref<1x16xf32, #tpu.memory_space<vmem>>, %arg11: memref<1x16xf32, #tpu.memory_space<vmem>>, %arg12: memref<4x16xf32, #tpu.memory_space<vmem>>, %arg13: memref<1x8x128xf32, #tpu.memory_space<vmem>>) attributes {dimension_semantics = [#tpu.dimension_semantics<parallel>], iteration_bounds = array<i64: 1>, scalar_prefetch = 0 : i64, scratch_operands = 0 : i64, tpu.core_type = #tpu.core_type<tc>, window_params = [{transform_indices = @transform_0, window_bounds = array<i64: 4, 64>}, {pipeline_mode = #tpu.pipeline_mode<synchronous>, transform_indices = @transform_1, window_bounds = array<i64: 64, 32>}, {pipeline_mode = #tpu.pipeline_mode<synchronous>, transform_indices = @transform_2, window_bounds = array<i64: 1, 32>}, {pipeline_mode = #tpu.pipeline_mode<synchronous>, transform_indices = @transform_3, window_bounds = array<i64: 32, 32>}, {pipeline_mode = #tpu.pipeline_mode<synchronous>, transform_indices = @transform_4, window_bounds = array<i64: 1, 32>}, {pipeline_mode = #tpu.pipeline_mode<synchronous>, transform_indices = @transform_5, window_bounds = array<i64: 32, 16>}, {pipeline_mode = #tpu.pipeline_mode<synchronous>, transform_indices = @transform_6, window_bounds = array<i64: 1, 16>}, {pipeline_mode = #tpu.pipeline_mode<synchronous>, transform_indices = @transform_7, window_bounds = array<i64: 32, 16>}, {pipeline_mode = #tpu.pipeline_mode<synchronous>, transform_indices = @transform_8, window_bounds = array<i64: 1, 16>}, {pipeline_mode = #tpu.pipeline_mode<synchronous>, transform_indices = @transform_9, window_bounds = array<i64: 1, 16>}, {pipeline_mode = #tpu.pipeline_mode<synchronous>, transform_indices = @transform_10, window_bounds = array<i64: 1, 16>}, {transform_indices = @transform_11, window_bounds = array<i64: 4, 16>}, {transform_indices = @transform_12, window_bounds = array<i64: 1, 8, 128>}]} {
    %c0 = arith.constant 0 : index
    %c0_0 = arith.constant 0 : index
    %0 = vector.load %arg1[%c0, %c0_0] : memref<4x64xf32, #tpu.memory_space<vmem>>, vector<4x64xf32>
    %1 = arith.truncf %0 : vector<4x64xf32> to vector<4x64xbf16>
    %c0_1 = arith.constant 0 : index
    %c0_2 = arith.constant 0 : index
    %2 = vector.load %arg2[%c0_1, %c0_2] : memref<64x32xbf16, #tpu.memory_space<vmem>>, vector<64x32xbf16>
    %cst = arith.constant dense<0.000000e+00> : vector<4x32xf32>
    %3 = tpu.matmul %1, %2, %cst {dimension_numbers = #tpu.dot_dimension_numbers<[1], [0], [0], [1], [0, 0, 1, 1], [], []>} : vector<4x64xbf16>, vector<64x32xbf16>, vector<4x32xf32> -> vector<4x32xf32>
    %c0_3 = arith.constant 0 : index
    %c0_4 = arith.constant 0 : index
    %4 = vector.load %arg3[%c0_3, %c0_4] : memref<1x32xf32, #tpu.memory_space<vmem>>, vector<1x32xf32>
    %5 = vector.broadcast %4 : vector<1x32xf32> to vector<4x32xf32>
    %6 = arith.addf %3, %5 : vector<4x32xf32>
    %7 = math.absf %6 : vector<4x32xf32>
    %cst_5 = arith.constant 0.000000e+00 : f32
    %8 = vector.broadcast %cst_5 : f32 to vector<4x32xf32>
    %9 = arith.subf %8, %7 : vector<4x32xf32>
    %10 = math.exp %9 : vector<4x32xf32>
    %cst_6 = arith.constant 1.000000e+00 : f32
    %11 = vector.broadcast %cst_6 : f32 to vector<4x32xf32>
    %12 = arith.addf %11, %10 : vector<4x32xf32>
    %13 = math.log %12 : vector<4x32xf32>
    %cst_7 = arith.constant 0.000000e+00 : f32
    %14 = vector.broadcast %cst_7 : f32 to vector<4x32xf32>
    %15 = arith.maximumf %6, %14 : vector<4x32xf32>
    %16 = arith.addf %13, %15 : vector<4x32xf32>
    %17 = arith.truncf %16 : vector<4x32xf32> to vector<4x32xbf16>
    %c0_8 = arith.constant 0 : index
    %c0_9 = arith.constant 0 : index
    %18 = vector.load %arg4[%c0_8, %c0_9] : memref<32x32xbf16, #tpu.memory_space<vmem>>, vector<32x32xbf16>
    %cst_10 = arith.constant dense<0.000000e+00> : vector<4x32xf32>
    %19 = tpu.matmul %17, %18, %cst_10 {dimension_numbers = #tpu.dot_dimension_numbers<[1], [0], [0], [1], [0, 0, 1, 1], [], []>} : vector<4x32xbf16>, vector<32x32xbf16>, vector<4x32xf32> -> vector<4x32xf32>
    %c0_11 = arith.constant 0 : index
    %c0_12 = arith.constant 0 : index
    %20 = vector.load %arg5[%c0_11, %c0_12] : memref<1x32xf32, #tpu.memory_space<vmem>>, vector<1x32xf32>
    %21 = vector.broadcast %20 : vector<1x32xf32> to vector<4x32xf32>
    %22 = arith.addf %19, %21 : vector<4x32xf32>
    %23 = math.absf %22 : vector<4x32xf32>
    %cst_13 = arith.constant 0.000000e+00 : f32
    %24 = vector.broadcast %cst_13 : f32 to vector<4x32xf32>
    %25 = arith.subf %24, %23 : vector<4x32xf32>
    %26 = math.exp %25 : vector<4x32xf32>
    %cst_14 = arith.constant 1.000000e+00 : f32
    %27 = vector.broadcast %cst_14 : f32 to vector<4x32xf32>
    %28 = arith.addf %27, %26 : vector<4x32xf32>
    %29 = math.log %28 : vector<4x32xf32>
    %cst_15 = arith.constant 0.000000e+00 : f32
    %30 = vector.broadcast %cst_15 : f32 to vector<4x32xf32>
    %31 = arith.maximumf %22, %30 : vector<4x32xf32>
    %32 = arith.addf %29, %31 : vector<4x32xf32>
    %33 = arith.truncf %32 : vector<4x32xf32> to vector<4x32xbf16>
    %c0_16 = arith.constant 0 : index
    %c0_17 = arith.constant 0 : index
    %34 = vector.load %arg6[%c0_16, %c0_17] : memref<32x16xbf16, #tpu.memory_space<vmem>>, vector<32x16xbf16>
    %cst_18 = arith.constant dense<0.000000e+00> : vector<4x16xf32>
    %35 = tpu.matmul %33, %34, %cst_18 {dimension_numbers = #tpu.dot_dimension_numbers<[1], [0], [0], [1], [0, 0, 1, 1], [], []>} : vector<4x32xbf16>, vector<32x16xbf16>, vector<4x16xf32> -> vector<4x16xf32>
    %c0_19 = arith.constant 0 : index
    %c0_20 = arith.constant 0 : index
    %36 = vector.load %arg7[%c0_19, %c0_20] : memref<1x16xf32, #tpu.memory_space<vmem>>, vector<1x16xf32>
    %37 = vector.broadcast %36 : vector<1x16xf32> to vector<4x16xf32>
    %38 = arith.addf %35, %37 : vector<4x16xf32>
    %cst_21 = arith.constant 0.999994993 : f32
    %39 = vector.broadcast %cst_21 : f32 to vector<4x16xf32>
    %40 = arith.mulf %38, %39 : vector<4x16xf32>
    %c0_22 = arith.constant 0 : index
    %c0_23 = arith.constant 0 : index
    %41 = vector.load %arg8[%c0_22, %c0_23] : memref<32x16xbf16, #tpu.memory_space<vmem>>, vector<32x16xbf16>
    %cst_24 = arith.constant dense<0.000000e+00> : vector<4x16xf32>
    %42 = tpu.matmul %33, %41, %cst_24 {dimension_numbers = #tpu.dot_dimension_numbers<[1], [0], [0], [1], [0, 0, 1, 1], [], []>} : vector<4x32xbf16>, vector<32x16xbf16>, vector<4x16xf32> -> vector<4x16xf32>
    %c0_25 = arith.constant 0 : index
    %c0_26 = arith.constant 0 : index
    %43 = vector.load %arg9[%c0_25, %c0_26] : memref<1x16xf32, #tpu.memory_space<vmem>>, vector<1x16xf32>
    %44 = vector.broadcast %43 : vector<1x16xf32> to vector<4x16xf32>
    %45 = arith.addf %42, %44 : vector<4x16xf32>
    %cst_27 = arith.constant 0.999994993 : f32
    %46 = vector.broadcast %cst_27 : f32 to vector<4x16xf32>
    %47 = arith.mulf %45, %46 : vector<4x16xf32>
    %c0_28 = arith.constant 0 : index
    %c0_29 = arith.constant 0 : index
    %48 = vector.load %arg10[%c0_28, %c0_29] : memref<1x16xf32, #tpu.memory_space<vmem>>, vector<1x16xf32>
    %c0_30 = arith.constant 0 : index
    %c0_31 = arith.constant 0 : index
    %49 = vector.load %arg11[%c0_30, %c0_31] : memref<1x16xf32, #tpu.memory_space<vmem>>, vector<1x16xf32>
    %50 = math.exp %47 : vector<4x16xf32>
    %51 = vector.broadcast %48 : vector<1x16xf32> to vector<4x16xf32>
    %52 = arith.subf %40, %51 : vector<4x16xf32>
    %53 = vector.broadcast %49 : vector<1x16xf32> to vector<4x16xf32>
    %54 = arith.divf %50, %53 : vector<4x16xf32>
    %55 = arith.mulf %52, %52 : vector<4x16xf32>
    %56 = vector.broadcast %49 : vector<1x16xf32> to vector<4x16xf32>
    %57 = arith.divf %55, %56 : vector<4x16xf32>
    %58 = arith.addf %54, %57 : vector<4x16xf32>
    %59 = math.log %49 : vector<1x16xf32>
    %60 = vector.broadcast %59 : vector<1x16xf32> to vector<4x16xf32>
    %61 = arith.addf %58, %60 : vector<4x16xf32>
    %62 = arith.subf %61, %47 : vector<4x16xf32>
    %cst_32 = arith.constant dense<0.000000e+00> : vector<4xf32>
    %63 = vector.multi_reduction <add>, %62, %cst_32 [1] : vector<4x16xf32> to vector<4xf32>
    %64 = vector.shape_cast %63 : vector<4xf32> to vector<4x1xf32>
    %cst_33 = arith.constant 1.600000e+01 : f32
    %65 = vector.broadcast %cst_33 : f32 to vector<4x1xf32>
    %66 = arith.subf %64, %65 : vector<4x1xf32>
    %cst_34 = arith.constant 5.000000e-01 : f32
    %67 = vector.broadcast %cst_34 : f32 to vector<4x1xf32>
    %68 = arith.mulf %67, %66 : vector<4x1xf32>
    %cst_35 = arith.constant 0.000000e+00 : f32
    %69 = vector.broadcast %cst_35 : f32 to vector<1x8x128xf32>
    %70 = vector.shape_cast %68 : vector<4x1xf32> to vector<1x4x1xf32>
    %cst_36 = arith.constant dense<0.000000e+00> : vector<1xf32>
    %71 = vector.multi_reduction <add>, %70, %cst_36 [1, 2] : vector<1x4x1xf32> to vector<1xf32>
    %72 = vector.shape_cast %71 : vector<1xf32> to vector<1x1x1xf32>
    %73 = vector.extract %72[0, 0, 0] : f32 from vector<1x1x1xf32>
    %74 = vector.broadcast %73 : f32 to vector<1x8x128xf32>
    %75 = arith.addf %69, %74 : vector<1x8x128xf32>
    %c0_37 = arith.constant 0 : index
    %c0_38 = arith.constant 0 : index
    %c0_39 = arith.constant 0 : index
    %76 = vector.load %arg13[%c0_37, %c0_38, %c0_39] : memref<1x8x128xf32, #tpu.memory_space<vmem>>, vector<1x8x128xf32>
    tpu.vector_store %arg13[%c0_37, %c0_38, %c0_39], %75 {strides = array<i32>} : memref<1x8x128xf32, #tpu.memory_space<vmem>>, vector<1x8x128xf32>,
    %cst_40 = arith.constant dense<0xFF800000> : vector<4xf32>
    %77 = vector.multi_reduction <maximumf>, %40, %cst_40 [1] : vector<4x16xf32> to vector<4xf32>
    %78 = vector.shape_cast %77 : vector<4xf32> to vector<4x1xf32>
    %79 = vector.broadcast %78 : vector<4x1xf32> to vector<4x16xf32>
    %80 = arith.subf %40, %79 : vector<4x16xf32>
    %81 = math.exp %80 : vector<4x16xf32>
    %cst_41 = arith.constant dense<0.000000e+00> : vector<4xf32>
    %82 = vector.multi_reduction <add>, %81, %cst_41 [1] : vector<4x16xf32> to vector<4xf32>
    %83 = vector.shape_cast %82 : vector<4xf32> to vector<4x1xf32>
    %84 = vector.broadcast %83 : vector<4x1xf32> to vector<4x16xf32>
    %85 = arith.divf %81, %84 : vector<4x16xf32>
    %c0_42 = arith.constant 0 : index
    %c0_43 = arith.constant 0 : index
    %86 = vector.load %arg12[%c0_42, %c0_43] : memref<4x16xf32, #tpu.memory_space<vmem>>, vector<4x16xf32>
    tpu.vector_store %arg12[%c0_42, %c0_43], %85 {strides = array<i32>} : memref<4x16xf32, #tpu.memory_space<vmem>>, vector<4x16xf32>,
    return
  }
  func.func @transform_0(%arg0: i32) -> (i32, i32) {
    %c0_i32 = arith.constant 0 : i32
    %c0_i32_0 = arith.constant 0 : i32
    return %arg0, %c0_i32 : i32, i32
  }
  func.func @transform_1(%arg0: i32) -> (i32, i32) {
    %c0_i32 = arith.constant 0 : i32
    %c0_i32_0 = arith.constant 0 : i32
    %c0_i32_1 = arith.constant 0 : i32
    return %c0_i32, %c0_i32_0 : i32, i32
  }
  func.func @transform_2(%arg0: i32) -> (i32, i32) {
    %c0_i32 = arith.constant 0 : i32
    %c0_i32_0 = arith.constant 0 : i32
    %c0_i32_1 = arith.constant 0 : i32
    return %c0_i32, %c0_i32_0 : i32, i32
  }
  func.func @transform_3(%arg0: i32) -> (i32, i32) {
    %c0_i32 = arith.constant 0 : i32
    %c0_i32_0 = arith.constant 0 : i32
    %c0_i32_1 = arith.constant 0 : i32
    return %c0_i32, %c0_i32_0 : i32, i32
  }
  func.func @transform_4(%arg0: i32) -> (i32, i32) {
    %c0_i32 = arith.constant 0 : i32
    %c0_i32_0 = arith.constant 0 : i32
    %c0_i32_1 = arith.constant 0 : i32
    return %c0_i32, %c0_i32_0 : i32, i32
  }
  func.func @transform_5(%arg0: i32) -> (i32, i32) {
    %c0_i32 = arith.constant 0 : i32
    %c0_i32_0 = arith.constant 0 : i32
    %c0_i32_1 = arith.constant 0 : i32
    return %c0_i32, %c0_i32_0 : i32, i32
  }
  func.func @transform_6(%arg0: i32) -> (i32, i32) {
    %c0_i32 = arith.constant 0 : i32
    %c0_i32_0 = arith.constant 0 : i32
    %c0_i32_1 = arith.constant 0 : i32
    return %c0_i32, %c0_i32_0 : i32, i32
  }
  func.func @transform_7(%arg0: i32) -> (i32, i32) {
    %c0_i32 = arith.constant 0 : i32
    %c0_i32_0 = arith.constant 0 : i32
    %c0_i32_1 = arith.constant 0 : i32
    return %c0_i32, %c0_i32_0 : i32, i32
  }
  func.func @transform_8(%arg0: i32) -> (i32, i32) {
    %c0_i32 = arith.constant 0 : i32
    %c0_i32_0 = arith.constant 0 : i32
    %c0_i32_1 = arith.constant 0 : i32
    return %c0_i32, %c0_i32_0 : i32, i32
  }
  func.func @transform_9(%arg0: i32) -> (i32, i32) {
    %c0_i32 = arith.constant 0 : i32
    %c0_i32_0 = arith.constant 0 : i32
    %c0_i32_1 = arith.constant 0 : i32
    return %c0_i32, %c0_i32_0 : i32, i32
  }
  func.func @transform_10(%arg0: i32) -> (i32, i32) {
    %c0_i32 = arith.constant 0 : i32
    %c0_i32_0 = arith.constant 0 : i32
    %c0_i32_1 = arith.constant 0 : i32
    return %c0_i32, %c0_i32_0 : i32, i32
  }
  func.func @transform_11(%arg0: i32) -> (i32, i32) {
    %c0_i32 = arith.constant 0 : i32
    %c0_i32_0 = arith.constant 0 : i32
    return %arg0, %c0_i32 : i32, i32
  }
  func.func @transform_12(%arg0: i32) -> (i32, i32, i32) {
    %c0_i32 = arith.constant 0 : i32
    %c0_i32_0 = arith.constant 0 : i32
    %c0_i32_1 = arith.constant 0 : i32
    return %arg0, %c0_i32, %c0_i32_0 : i32, i32, i32
  }
}

module attributes {stable_mosaic.version = 11 : i64} {
  func.func @_subdoc_recon_kernel(%arg0: i32, %arg1: memref<8x16xf32, #tpu.memory_space<vmem>>, %arg2: memref<8x16xf32, #tpu.memory_space<vmem>>, %arg3: memref<16x64xbf16, #tpu.memory_space<vmem>>, %arg4: memref<8x64xf32, #tpu.memory_space<vmem>>, %arg5: memref<1x8x128xf32, #tpu.memory_space<vmem>>) attributes {dimension_semantics = [#tpu.dimension_semantics<parallel>], iteration_bounds = array<i64: 1>, scalar_prefetch = 0 : i64, scratch_operands = 0 : i64, tpu.core_type = #tpu.core_type<tc>, window_params = [{transform_indices = @transform_0, window_bounds = array<i64: 8, 16>}, {transform_indices = @transform_1, window_bounds = array<i64: 8, 16>}, {pipeline_mode = #tpu.pipeline_mode<synchronous>, transform_indices = @transform_2, window_bounds = array<i64: 16, 64>}, {transform_indices = @transform_3, window_bounds = array<i64: 8, 64>}, {transform_indices = @transform_4, window_bounds = array<i64: 1, 8, 128>}]} {
    %c0 = arith.constant 0 : index
    %c0_0 = arith.constant 0 : index
    %0 = vector.load %arg1[%c0, %c0_0] : memref<8x16xf32, #tpu.memory_space<vmem>>, vector<8x16xf32>
    %c0_1 = arith.constant 0 : index
    %c0_2 = arith.constant 0 : index
    %1 = vector.load %arg2[%c0_1, %c0_2] : memref<8x16xf32, #tpu.memory_space<vmem>>, vector<8x16xf32>
    %2 = arith.mulf %0, %1 : vector<8x16xf32>
    %cst = arith.constant dense<0xFF800000> : vector<8xf32>
    %3 = vector.multi_reduction <maximumf>, %2, %cst [1] : vector<8x16xf32> to vector<8xf32>
    %4 = vector.shape_cast %3 : vector<8xf32> to vector<8x1xf32>
    %5 = vector.broadcast %4 : vector<8x1xf32> to vector<8x16xf32>
    %6 = arith.subf %2, %5 : vector<8x16xf32>
    %7 = math.exp %6 : vector<8x16xf32>
    %cst_3 = arith.constant dense<0.000000e+00> : vector<8xf32>
    %8 = vector.multi_reduction <add>, %7, %cst_3 [1] : vector<8x16xf32> to vector<8xf32>
    %9 = vector.shape_cast %8 : vector<8xf32> to vector<8x1xf32>
    %10 = vector.broadcast %9 : vector<8x1xf32> to vector<8x16xf32>
    %11 = arith.divf %7, %10 : vector<8x16xf32>
    %12 = arith.truncf %11 : vector<8x16xf32> to vector<8x16xbf16>
    %c0_4 = arith.constant 0 : index
    %c0_5 = arith.constant 0 : index
    %13 = vector.load %arg3[%c0_4, %c0_5] : memref<16x64xbf16, #tpu.memory_space<vmem>>, vector<16x64xbf16>
    %cst_6 = arith.constant dense<0.000000e+00> : vector<8x64xf32>
    %14 = tpu.matmul %12, %13, %cst_6 {dimension_numbers = #tpu.dot_dimension_numbers<[1], [0], [0], [1], [0, 0, 1, 1], [], []>} : vector<8x16xbf16>, vector<16x64xbf16>, vector<8x64xf32> -> vector<8x64xf32>
    %cst_7 = arith.constant 0.999994993 : f32
    %15 = vector.broadcast %cst_7 : f32 to vector<8x64xf32>
    %16 = arith.mulf %14, %15 : vector<8x64xf32>
    %cst_8 = arith.constant dense<0xFF800000> : vector<8xf32>
    %17 = vector.multi_reduction <maximumf>, %16, %cst_8 [1] : vector<8x64xf32> to vector<8xf32>
    %18 = vector.shape_cast %17 : vector<8xf32> to vector<8x1xf32>
    %19 = vector.broadcast %18 : vector<8x1xf32> to vector<8x64xf32>
    %20 = arith.subf %16, %19 : vector<8x64xf32>
    %21 = math.exp %20 : vector<8x64xf32>
    %cst_9 = arith.constant dense<0.000000e+00> : vector<8xf32>
    %22 = vector.multi_reduction <add>, %21, %cst_9 [1] : vector<8x64xf32> to vector<8xf32>
    %23 = vector.shape_cast %22 : vector<8xf32> to vector<8x1xf32>
    %24 = math.log %23 : vector<8x1xf32>
    %25 = arith.addf %24, %18 : vector<8x1xf32>
    %c0_10 = arith.constant 0 : index
    %c0_11 = arith.constant 0 : index
    %26 = vector.load %arg4[%c0_10, %c0_11] : memref<8x64xf32, #tpu.memory_space<vmem>>, vector<8x64xf32>
    %27 = vector.broadcast %25 : vector<8x1xf32> to vector<8x64xf32>
    %28 = arith.subf %27, %16 : vector<8x64xf32>
    %29 = arith.mulf %26, %28 : vector<8x64xf32>
    %30 = vector.shape_cast %29 : vector<8x64xf32> to vector<1x8x64xf32>
    %cst_12 = arith.constant dense<0.000000e+00> : vector<1xf32>
    %31 = vector.multi_reduction <add>, %30, %cst_12 [1, 2] : vector<1x8x64xf32> to vector<1xf32>
    %32 = vector.shape_cast %31 : vector<1xf32> to vector<1x1x1xf32>
    %33 = vector.extract %32[0, 0, 0] : f32 from vector<1x1x1xf32>
    %cst_13 = arith.constant 0.000000e+00 : f32
    %34 = vector.broadcast %cst_13 : f32 to vector<1x8x128xf32>
    %35 = vector.broadcast %33 : f32 to vector<1x8x128xf32>
    %36 = arith.addf %34, %35 : vector<1x8x128xf32>
    %c0_14 = arith.constant 0 : index
    %c0_15 = arith.constant 0 : index
    %c0_16 = arith.constant 0 : index
    %37 = vector.load %arg5[%c0_14, %c0_15, %c0_16] : memref<1x8x128xf32, #tpu.memory_space<vmem>>, vector<1x8x128xf32>
    tpu.vector_store %arg5[%c0_14, %c0_15, %c0_16], %36 {strides = array<i32>} : memref<1x8x128xf32, #tpu.memory_space<vmem>>, vector<1x8x128xf32>,
    return
  }
  func.func @transform_0(%arg0: i32) -> (i32, i32) {
    %c0_i32 = arith.constant 0 : i32
    %c0_i32_0 = arith.constant 0 : i32
    return %arg0, %c0_i32 : i32, i32
  }
  func.func @transform_1(%arg0: i32) -> (i32, i32) {
    %c0_i32 = arith.constant 0 : i32
    %c0_i32_0 = arith.constant 0 : i32
    return %arg0, %c0_i32 : i32, i32
  }
  func.func @transform_2(%arg0: i32) -> (i32, i32) {
    %c0_i32 = arith.constant 0 : i32
    %c0_i32_0 = arith.constant 0 : i32
    %c0_i32_1 = arith.constant 0 : i32
    return %c0_i32, %c0_i32_0 : i32, i32
  }
  func.func @transform_3(%arg0: i32) -> (i32, i32) {
    %c0_i32 = arith.constant 0 : i32
    %c0_i32_0 = arith.constant 0 : i32
    return %arg0, %c0_i32 : i32, i32
  }
  func.func @transform_4(%arg0: i32) -> (i32, i32, i32) {
    %c0_i32 = arith.constant 0 : i32
    %c0_i32_0 = arith.constant 0 : i32
    %c0_i32_1 = arith.constant 0 : i32
    return %arg0, %c0_i32, %c0_i32_0 : i32, i32, i32
  }
}

module attributes {stable_mosaic.version = 11 : i64} {
  func.func @_beta_kernel(%arg0: i32, %arg1: memref<16x32xf32, #tpu.memory_space<vmem>>, %arg2: memref<32x64xf32, #tpu.memory_space<vmem>>, %arg3: memref<16x64xf32, #tpu.memory_space<vmem>>, %arg4: memref<16x64xf32, #tpu.memory_space<vmem>>, %arg5: memref<16x64xf32, #tpu.memory_space<vmem>>) attributes {dimension_semantics = [#tpu.dimension_semantics<parallel>], iteration_bounds = array<i64: 1>, scalar_prefetch = 0 : i64, scratch_operands = 0 : i64, tpu.core_type = #tpu.core_type<tc>, window_params = [{pipeline_mode = #tpu.pipeline_mode<synchronous>, transform_indices = @transform_0, window_bounds = array<i64: 16, 32>}, {transform_indices = @transform_1, window_bounds = array<i64: 32, 64>}, {transform_indices = @transform_2, window_bounds = array<i64: 16, 64>}, {transform_indices = @transform_3, window_bounds = array<i64: 16, 64>}, {transform_indices = @transform_4, window_bounds = array<i64: 16, 64>}]} {
    %c0 = arith.constant 0 : index
    %c0_0 = arith.constant 0 : index
    %0 = vector.load %arg1[%c0, %c0_0] : memref<16x32xf32, #tpu.memory_space<vmem>>, vector<16x32xf32>
    %c0_1 = arith.constant 0 : index
    %c0_2 = arith.constant 0 : index
    %1 = vector.load %arg2[%c0_1, %c0_2] : memref<32x64xf32, #tpu.memory_space<vmem>>, vector<32x64xf32>
    %2 = arith.mulf %0, %0 : vector<16x32xf32>
    %cst = arith.constant dense<0.000000e+00> : vector<16xf32>
    %3 = vector.multi_reduction <add>, %2, %cst [1] : vector<16x32xf32> to vector<16xf32>
    %4 = vector.shape_cast %3 : vector<16xf32> to vector<16x1xf32>
    %5 = arith.mulf %1, %1 : vector<32x64xf32>
    %cst_3 = arith.constant dense<0.000000e+00> : vector<64xf32>
    %6 = vector.multi_reduction <add>, %5, %cst_3 [0] : vector<32x64xf32> to vector<64xf32>
    %7 = vector.shape_cast %6 : vector<64xf32> to vector<1x64xf32>
    %8 = vector.broadcast %4 : vector<16x1xf32> to vector<16x64xf32>
    %9 = vector.broadcast %7 : vector<1x64xf32> to vector<16x64xf32>
    %10 = arith.addf %8, %9 : vector<16x64xf32>
    %11 = arith.truncf %0 : vector<16x32xf32> to vector<16x32xbf16>
    %12 = arith.truncf %1 : vector<32x64xf32> to vector<32x64xbf16>
    %cst_4 = arith.constant dense<0.000000e+00> : vector<16x64xf32>
    %13 = tpu.matmul %11, %12, %cst_4 {dimension_numbers = #tpu.dot_dimension_numbers<[1], [0], [0], [1], [0, 0, 1, 1], [], []>} : vector<16x32xbf16>, vector<32x64xbf16>, vector<16x64xf32> -> vector<16x64xf32>
    %cst_5 = arith.constant 2.000000e+00 : f32
    %14 = vector.broadcast %cst_5 : f32 to vector<16x64xf32>
    %15 = arith.mulf %14, %13 : vector<16x64xf32>
    %16 = arith.subf %10, %15 : vector<16x64xf32>
    %cst_6 = arith.constant 0.000000e+00 : f32
    %17 = vector.broadcast %cst_6 : f32 to vector<16x64xf32>
    %18 = arith.subf %17, %16 : vector<16x64xf32>
    %cst_7 = arith.constant 2.000000e-01 : f32
    %19 = vector.broadcast %cst_7 : f32 to vector<16x64xf32>
    %20 = arith.divf %18, %19 : vector<16x64xf32>
    %cst_8 = arith.constant dense<0xFF800000> : vector<64xf32>
    %21 = vector.multi_reduction <maximumf>, %20, %cst_8 [0] : vector<16x64xf32> to vector<64xf32>
    %22 = vector.shape_cast %21 : vector<64xf32> to vector<1x64xf32>
    %23 = vector.broadcast %22 : vector<1x64xf32> to vector<16x64xf32>
    %24 = arith.subf %20, %23 : vector<16x64xf32>
    %25 = math.exp %24 : vector<16x64xf32>
    %cst_9 = arith.constant dense<0.000000e+00> : vector<64xf32>
    %26 = vector.multi_reduction <add>, %25, %cst_9 [0] : vector<16x64xf32> to vector<64xf32>
    %27 = vector.shape_cast %26 : vector<64xf32> to vector<1x64xf32>
    %28 = vector.broadcast %27 : vector<1x64xf32> to vector<16x64xf32>
    %29 = arith.divf %25, %28 : vector<16x64xf32>
    %c0_10 = arith.constant 0 : index
    %c0_11 = arith.constant 0 : index
    %30 = vector.load %arg3[%c0_10, %c0_11] : memref<16x64xf32, #tpu.memory_space<vmem>>, vector<16x64xf32>
    tpu.vector_store %arg3[%c0_10, %c0_11], %29 {strides = array<i32>} : memref<16x64xf32, #tpu.memory_space<vmem>>, vector<16x64xf32>,
    %c0_12 = arith.constant 0 : index
    %c0_13 = arith.constant 0 : index
    %31 = vector.load %arg4[%c0_12, %c0_13] : memref<16x64xf32, #tpu.memory_space<vmem>>, vector<16x64xf32>
    tpu.vector_store %arg4[%c0_12, %c0_13], %16 {strides = array<i32>} : memref<16x64xf32, #tpu.memory_space<vmem>>, vector<16x64xf32>,
    %cst_14 = arith.constant 0.000000e+00 : f32
    %32 = vector.broadcast %cst_14 : f32 to vector<16x64xf32>
    %33 = arith.subf %32, %16 : vector<16x64xf32>
    %cst_15 = arith.constant 2.000000e+01 : f32
    %34 = vector.broadcast %cst_15 : f32 to vector<16x64xf32>
    %35 = arith.mulf %33, %34 : vector<16x64xf32>
    %36 = math.exp %35 : vector<16x64xf32>
    %c0_16 = arith.constant 0 : index
    %c0_17 = arith.constant 0 : index
    %37 = vector.load %arg5[%c0_16, %c0_17] : memref<16x64xf32, #tpu.memory_space<vmem>>, vector<16x64xf32>
    tpu.vector_store %arg5[%c0_16, %c0_17], %36 {strides = array<i32>} : memref<16x64xf32, #tpu.memory_space<vmem>>, vector<16x64xf32>,
    return
  }
  func.func @transform_0(%arg0: i32) -> (i32, i32) {
    %c0_i32 = arith.constant 0 : i32
    %c0_i32_0 = arith.constant 0 : i32
    %c0_i32_1 = arith.constant 0 : i32
    return %c0_i32, %c0_i32_0 : i32, i32
  }
  func.func @transform_1(%arg0: i32) -> (i32, i32) {
    %c0_i32 = arith.constant 0 : i32
    %c0_i32_0 = arith.constant 0 : i32
    return %c0_i32, %arg0 : i32, i32
  }
  func.func @transform_2(%arg0: i32) -> (i32, i32) {
    %c0_i32 = arith.constant 0 : i32
    %c0_i32_0 = arith.constant 0 : i32
    return %c0_i32, %arg0 : i32, i32
  }
  func.func @transform_3(%arg0: i32) -> (i32, i32) {
    %c0_i32 = arith.constant 0 : i32
    %c0_i32_0 = arith.constant 0 : i32
    return %c0_i32, %arg0 : i32, i32
  }
  func.func @transform_4(%arg0: i32) -> (i32, i32) {
    %c0_i32 = arith.constant 0 : i32
    %c0_i32_0 = arith.constant 0 : i32
    return %c0_i32, %arg0 : i32, i32
  }
}

module attributes {stable_mosaic.version = 11 : i64} {
  func.func @_sinkhorn_step_kernel(%arg0: memref<16x64xf32, #tpu.memory_space<vmem>>, %arg1: memref<16x1xf32, #tpu.memory_space<vmem>>, %arg2: memref<16x1xf32, #tpu.memory_space<vmem>>, %arg3: memref<1x64xf32, #tpu.memory_space<vmem>>) attributes {dimension_semantics = [], scalar_prefetch = 0 : i64, scratch_operands = 0 : i64, tpu.core_type = #tpu.core_type<tc>} {
    %c0 = arith.constant 0 : index
    %c0_0 = arith.constant 0 : index
    %0 = vector.load %arg0[%c0, %c0_0] : memref<16x64xf32, #tpu.memory_space<vmem>>, vector<16x64xf32>
    %c0_1 = arith.constant 0 : index
    %c0_2 = arith.constant 0 : index
    %1 = vector.load %arg1[%c0_1, %c0_2] : memref<16x1xf32, #tpu.memory_space<vmem>>, vector<16x1xf32>
    %2 = vector.broadcast %1 : vector<16x1xf32> to vector<16x64xf32>
    %3 = arith.mulf %0, %2 : vector<16x64xf32>
    %cst = arith.constant dense<0.000000e+00> : vector<64xf32>
    %4 = vector.multi_reduction <add>, %3, %cst [0] : vector<16x64xf32> to vector<64xf32>
    %5 = vector.shape_cast %4 : vector<64xf32> to vector<1x64xf32>
    %cst_3 = arith.constant 1.000000e-16 : f32
    %6 = vector.broadcast %cst_3 : f32 to vector<1x64xf32>
    %7 = arith.addf %5, %6 : vector<1x64xf32>
    %cst_4 = arith.constant 1.562500e-02 : f32
    %8 = vector.broadcast %cst_4 : f32 to vector<1x64xf32>
    %9 = arith.divf %8, %7 : vector<1x64xf32>
    %10 = vector.broadcast %9 : vector<1x64xf32> to vector<16x64xf32>
    %11 = arith.mulf %0, %10 : vector<16x64xf32>
    %cst_5 = arith.constant dense<0.000000e+00> : vector<16xf32>
    %12 = vector.multi_reduction <add>, %11, %cst_5 [1] : vector<16x64xf32> to vector<16xf32>
    %13 = vector.shape_cast %12 : vector<16xf32> to vector<16x1xf32>
    %cst_6 = arith.constant 1.000000e-16 : f32
    %14 = vector.broadcast %cst_6 : f32 to vector<16x1xf32>
    %15 = arith.addf %13, %14 : vector<16x1xf32>
    %cst_7 = arith.constant 6.250000e-02 : f32
    %16 = vector.broadcast %cst_7 : f32 to vector<16x1xf32>
    %17 = arith.divf %16, %15 : vector<16x1xf32>
    %c0_8 = arith.constant 0 : index
    %c0_9 = arith.constant 0 : index
    %18 = vector.load %arg2[%c0_8, %c0_9] : memref<16x1xf32, #tpu.memory_space<vmem>>, vector<16x1xf32>
    tpu.vector_store %arg2[%c0_8, %c0_9], %17 {strides = array<i32>} : memref<16x1xf32, #tpu.memory_space<vmem>>, vector<16x1xf32>,
    %c0_10 = arith.constant 0 : index
    %c0_11 = arith.constant 0 : index
    %19 = vector.load %arg3[%c0_10, %c0_11] : memref<1x64xf32, #tpu.memory_space<vmem>>, vector<1x64xf32>
    tpu.vector_store %arg3[%c0_10, %c0_11], %9 {strides = array<i32>} : memref<1x64xf32, #tpu.memory_space<vmem>>, vector<1x64xf32>,
    return
  }
}

</mosaic_0001>

<bundles_post_ra>
// kernel: _lambda_.7
= control target key start
LH: loop header
LB: loop body
LE: loop exit
PB: predicated region body
PF: predicated region fallthrough
CT: control target
= control target key end

     0   :  { %9 = vsyncpa [#allocation3], 0  ;;  %s430_s0 = inlined_call_operand.hbm [shape: f32[8,16], index: 0, kind: input, shape index: {}]   ;;  %s431_s1 = inlined_call_operand.hbm [shape: f32[8,16], index: 1, kind: input, shape index: {}]   ;;  %s432_s2 = inlined_call_operand.hbm [shape: bf16[16,64], index: 2, kind: input, shape index: {}]   ;;  %s433_s3 = inlined_call_operand.hbm [shape: f32[8,64], index: 3, kind: input, shape index: {}]   ;;  %s434_s4 = inlined_call_operand.hbm [shape: f32[1,8,128], index: 4, kind: output, shape index: {}]  }
   0x1   :  { %10 = vsyncpa [#allocation6], 0 }
   0x2   :  { %11 = vsyncpa [#allocation9], 0 }
   0x3   :  { %12 = vsyncpa [#allocation4], 0  ;;  %s330_s15 = smov [#allocation5]   ;;  %s331_s17 = smov [#allocation2]  }
   0x4   :  { %s29_s16 = sshll.u32 %s330_s15, 4  ;;  %s19_s18 = sshll.u32 %s331_s17, 4  ;;  %s30_s16 = int_to_ptr.vmem [resolvable:$true] %s29_s16  ;;  %s20_s18 = int_to_ptr.vmem [resolvable:$true] %s19_s18 }
   0x5   :  { %s212_s21 = scalar_lea.hbm %s431_s1, 128 }
   0x6   :  { %p213_p0 = scmp.ne.s32.totalorder %s431_s1, %s212_s21  ;;  %p216_p1 = scmp.lt.u32.totalorder %s212_s21, %s431_s1 }
   0x8   :  { %p218_p2 = pnand %p216_p1, %p213_p0 }
   0xa   :  { %221 = shalt.err (!%p218_p2)
}
   0xb   :  { %s222_s26 = scalar_lea.vmem %s30_s16, 128  ;;  %p227_p4 = scmp.lt.s32.totalorder %s30_s16, %s30_s16 }
   0xc   :  { %p223_p3 = scmp.ne.s32.totalorder %s30_s16, %s222_s26  ;;  %p228_p5 = scmp.lt.s32.totalorder %s222_s26, %s222_s26 }
   0xe   :  { %p229_p6 = por %p228_p5, %p227_p4 }
  0x10   :  { %p230_p7 = pnand %p229_p6, %p223_p3 }
  0x12   :  { %233 = shalt.err (!%p230_p7)
}
  0x13   :  { %32 = dma.hbm_to_vmem [thread:$0]  %s431_s1, 128, %s30_s16, [#allocation6]  }
  0x14   :  { %s234_s5 = scalar_lea.hbm %s430_s0, 128 }
  0x15   :  { %p235_p8 = scmp.ne.s32.totalorder %s430_s0, %s234_s5  ;;  %p238_p9 = scmp.lt.u32.totalorder %s234_s5, %s430_s0 }
  0x17   :  { %p240_p10 = pnand %p238_p9, %p235_p8 }
  0x19   :  { %243 = shalt.err (!%p240_p10)
}
  0x1a   :  { %s244_s10 = scalar_lea.vmem %s20_s18, 128  ;;  %p249_p12 = scmp.lt.s32.totalorder %s20_s18, %s20_s18 }
  0x1b   :  { %p245_p11 = scmp.ne.s32.totalorder %s20_s18, %s244_s10  ;;  %p250_p13 = scmp.lt.s32.totalorder %s244_s10, %s244_s10 }
  0x1d   :  { %p251_p0 = por %p250_p13, %p249_p12 }
  0x1f   :  { %p252_p1 = pnand %p251_p0, %p245_p11 }
  0x21   :  { %255 = shalt.err (!%p252_p1)
}
  0x22   :  { %22 = dma.hbm_to_vmem [thread:$0]  %s430_s0, 128, %s20_s18, [#allocation3]  }
  0x23   :  { %s332_s12 = smov [#allocation7]   ;;  %s256_s16 = scalar_lea.hbm %s432_s2, 128 }
  0x24   :  { %s38_s13 = sshll.u32 %s332_s12, 4  ;;  %p257_p2 = scmp.ne.s32.totalorder %s432_s2, %s256_s16  ;;  %s39_s13 = int_to_ptr.vmem [resolvable:$true] %s38_s13 }
  0x25   :  { %p260_p3 = scmp.lt.u32.totalorder %s256_s16, %s432_s2 }
  0x27   :  { %p262_p4 = pnand %p260_p3, %p257_p2 }
  0x29   :  { %265 = shalt.err (!%p262_p4)
}
  0x2a   :  { %s266_s22 = scalar_lea.vmem %s39_s13, 128  ;;  %p271_p6 = scmp.lt.s32.totalorder %s39_s13, %s39_s13 }
  0x2b   :  { %p267_p5 = scmp.ne.s32.totalorder %s39_s13, %s266_s22  ;;  %p272_p7 = scmp.lt.s32.totalorder %s266_s22, %s266_s22 }
  0x2d   :  { %p273_p8 = por %p272_p7, %p271_p6 }
  0x2f   :  { %p274_p9 = pnand %p273_p8, %p267_p5 }
  0x31   :  { %277 = shalt.err (!%p274_p9)
}
  0x32   :  { %s333_s0 = smov 64   ;;  %s334_s18 = smov 4  }
  0x33   :  { %44 = dma.hbm_to_vmem [thread:$0]  %s432_s2, 128, %s39_s13, [#allocation6], %s333_s0, %s333_s0, %s334_s18  }
  0x34   :  { %s335_s25 = smov [#allocation8]   ;;  %s278_s29 = scalar_lea.hbm %s433_s3, 128 }
  0x35   :  { %s51_s26 = sshll.u32 %s335_s25, 4  ;;  %p279_p10 = scmp.ne.s32.totalorder %s433_s3, %s278_s29  ;;  %s52_s26 = int_to_ptr.vmem [resolvable:$true] %s51_s26 }
  0x36   :  { %p282_p11 = scmp.lt.u32.totalorder %s278_s29, %s433_s3 }
  0x38   :  { %p284_p12 = pnand %p282_p11, %p279_p10 }
  0x3a   :  { %287 = shalt.err (!%p284_p12)
}
  0x3b   :  { %s288_s8 = scalar_lea.vmem %s52_s26, 128  ;;  %p293_p0 = scmp.lt.s32.totalorder %s52_s26, %s52_s26 }
  0x3c   :  { %p289_p13 = scmp.ne.s32.totalorder %s52_s26, %s288_s8  ;;  %p294_p1 = scmp.lt.s32.totalorder %s288_s8, %s288_s8 }
  0x3e   :  { %p295_p2 = por %p294_p1, %p293_p0 }
  0x40   :  { %p296_p3 = pnand %p295_p2, %p289_p13 }
  0x42   :  { %299 = shalt.err (!%p296_p3)
}
  0x43   :  { %54 = dma.hbm_to_vmem [thread:$0]  %s433_s3, 128, %s52_s26, [#allocation9]  }
  0x44   :  { %322 = dma.done.wait [#allocation3], 128  }
  0x45   :  { %323 = vsyncadd [#allocation3], 4294967168 }
  0x46   :  { %324 = dma.done.wait [#allocation6], 256  }
  0x47   :  { %325 = vsyncadd [#allocation6], 4294967040 }
  0x48   :  { %326 = dma.done.wait [#allocation9], 128  }
  0x49   :  { %327 = vsyncadd [#allocation9], 4294967168  ;;  %v68_v0 = vld [vmem:[#allocation2] sm:$0xff]  ;;  %v69_v1 = vld [vmem:[#allocation5] sm:$0xff]  ;;  %vm71_vm0 = vcmask 130048   ;;  %v336_v10 = vmov 0.0  }
  0x4a   :  { %v70_v2 = vmul.f32 %v69_v1, %v68_v0  ;;  %v203_v9 = vld [vmem:[#allocation7] sm:$0xff]   ;;  %186 = vmatprep.subr.bf16.mxu0 %v336_v10  ;;  %vm337_vm1 = vmmov 0   ;;  %vm136_vm2 = vcmask 523264   ;;  %v149_v30 = vld [vmem:[#allocation8] sm:$0xff]  ;;  %s338_s3 = smov [#allocation10]  }
  0x4b   :  { %188 = vmatprep.mubr.msk.bf16.mxu0 %vm337_vm1, %v336_v10  ;;  %187 = vmatpush3.bf16.msra.mxu0 %v203_v9  ;;  %s171_s10 = sshll.u32 %s338_s3, 4  ;;  %s172_s10 = int_to_ptr.vmem [resolvable:$true] %s171_s10 }
  0x4c   :  { %v72_v3 = vsel %vm71_vm0, %v70_v2, -inf  ;;  %s300_s11 = scalar_lea.vmem %s172_s10, 128  ;;  %p305_p5 = scmp.lt.s32.totalorder %s172_s10, %s172_s10 }
  0x4d   :  { %73 = vmax.xlane.f32.xlu0 %v72_v3  ;;  %p301_p4 = scmp.ne.s32.totalorder %s172_s10, %s300_s11  ;;  %p306_p6 = scmp.lt.s32.totalorder %s300_s11, %s300_s11 }
  0x4f   :  { %p307_p7 = por %p306_p6, %p305_p5 }
  0x51   :  { %p308_p8 = pnand %p307_p7, %p301_p4 }
  0xda   :  { %v74_v4 = vpop.xlane.xlu0 %73 }
  0xdb   :  { %v75_v5 = vsub.f32 %v70_v2, %v74_v4 }
  0xdd   :  { %v76_v6 = vmul.f32 1.442695, %v75_v5 }
  0xdf   :  { %204 = vpow2.f32 %v76_v6 }
  0xe9   :  { %v205_v7 = vpop.eup %204 }
  0xea   :  { %v78_v8 = vsel %vm71_vm0, %v205_v7, 0.0 }
  0xeb   :  { %79 = vadd.xlane.f32.xlu0 %v78_v8 }
 0x178   :  { %v80_v11 = vpop.xlane.xlu0 %79 }
 0x179   :  { %206 = vrcp.f32 %v80_v11 }
 0x183   :  { %v207_v12 = vpop.eup %206 }
 0x184   :  { %v82_v13 = vmul.f32 %v207_v12, %v205_v7 }
 0x186   :  { %v83_v14 = vpack.c.bf16 %v82_v13, %v82_v13 }
 0x188   :  { %189 = vmatmul.mubr.msk.bf16.vlgmr.msra.gmra.mrb[0].mxu0 %vm71_vm0, %v83_v14 }
 0x25b   :  { %v129_v15 = vpop.f32.mrb[0].mxu0 }
 0x25c   :  { %v135_v16 = vmul.f32 0.999995, %v129_v15  ;;  %v190_v17 = vpop.f32.mrb[1].mxu0 }
 0x25d   :  { %v132_v18 = vpop.f32.mrb[2].mxu0 }
 0x25e   :  { %v191_v19 = vpop.f32.mrb[3].mxu0  ;;  %v137_v20 = vsel %vm136_vm2, %v135_v16, -inf }
 0x25f   :  { %138 = vmax.xlane.f32.xlu1 %v137_v20 }
 0x2ec   :  { %v139_v21 = vpop.xlane.xlu1 %138 }
 0x2ed   :  { %v140_v22 = vsub.f32 %v135_v16, %v139_v21 }
 0x2ef   :  { %v141_v23 = vmul.f32 1.442695, %v140_v22 }
 0x2f1   :  { %208 = vpow2.f32 %v141_v23 }
 0x2fb   :  { %v209_v24 = vpop.eup %208 }
 0x2fc   :  { %v143_v25 = vsel %vm136_vm2, %v209_v24, 0.0 }
 0x2fd   :  { %144 = vadd.xlane.f32.xlu1 %v143_v25 }
 0x38a   :  { %v145_v26 = vpop.xlane.xlu1 %144 }
 0x38b   :  { %210 = vlog2.f32 %v145_v26 }
 0x395   :  { %v211_v27 = vpop.eup %210 }
 0x396   :  { %v147_v28 = vmul.f32 0.6931472, %v211_v27 }
 0x398   :  { %v148_v29 = vadd.f32 %v147_v28, %v139_v21 }
 0x39a   :  { %v150_v31 = vsub.f32 %v148_v29, %v135_v16 }
 0x39c   :  { %v151_v32 = vmul.f32 %v150_v31, %v149_v30 }
 0x39e   :  { %v152_v33 = vsel %vm136_vm2, %v151_v32, 0.0 }
 0x39f   :  { %153 = vadd.xlane.f32.xlu0 %v152_v33 }
 0x42c   :  { %v154_v34 = vpop.xlane.xlu0 %153 }
 0x42d   :  { %v155_v35 = vrot.slane %v154_v34, 4 }
 0x42f   :  { %v156_v36 = vadd.f32 %v155_v35, %v154_v34 }
 0x431   :  { %v157_v37 = vrot.slane %v156_v36, 2 }
 0x433   :  { %v158_v38 = vadd.f32 %v157_v37, %v156_v36 }
 0x435   :  { %v159_v39 = vrot.slane %v158_v38, 1 }
 0x437   :  { %v160_v40 = vadd.f32 %v159_v39, %v158_v38 }
 0x439   :  { %192 = vpush %v160_v40 }
 0x46a   :  { %s193_s1 = spop %192 }
 0x46b   :  { %v162_v41 = vstv %s193_s1 }
 0x46c   :  { %164 = vst [vmem:[#allocation10] sm:$0xff] %v162_v41 }
 0x46d   :  { %311 = shalt.err (!%p308_p8)
}
 0x46e   :  { %s312_s14 = scalar_lea.hbm %s434_s4, 128 }
 0x46f   :  { %p313_p9 = scmp.ne.s32.totalorder %s434_s4, %s312_s14  ;;  %p316_p10 = scmp.lt.u32.totalorder %s312_s14, %s434_s4 }
 0x471   :  { %p318_p11 = pnand %p316_p10, %p313_p9 }
 0x473   :  { %321 = shalt.err (!%p318_p11)
}
 0x474   :  { %174 = dma.vmem_to_hbm [thread:$0]  %s172_s10, 128, %s434_s4, [#allocation4]  }
 0x475   :  { %328 = dma.done.wait [#allocation4], 128  }
 0x476   :  { %329 = vsyncadd [#allocation4], 4294967168 }
 0x477   :  { %178 = vsyncpa [#allocation3], 1 }
 0x478   :  { %179 = vsyncpa [#allocation6], 1 }
 0x479   :  { %180 = vsyncpa [#allocation9], 1 }
 0x47a   :  { %181 = vsyncpa [#allocation4], 1 }

// kernel: _lambda_.6
= control target key start
LH: loop header
LB: loop body
LE: loop exit
PB: predicated region body
PF: predicated region fallthrough
CT: control target
= control target key end

     0   :  { %18 = vsyncpa [#allocation3], 0  ;;  %s1242_s0 = inlined_call_operand.hbm [shape: f32[8,64], index: 0, kind: input, shape index: {}]   ;;  %s1243_s1 = inlined_call_operand.hbm [shape: bf16[64,32], index: 1, kind: input, shape index: {}]   ;;  %s1244_s2 = inlined_call_operand.hbm [shape: f32[1,32], index: 2, kind: input, shape index: {}]   ;;  %s1245_s3 = inlined_call_operand.hbm [shape: bf16[32,32], index: 3, kind: input, shape index: {}]   ;;  %s1246_s4 = inlined_call_operand.hbm [shape: f32[1,32], index: 4, kind: input, shape index: {}]   ;;  %s1247_s5 = inlined_call_operand.hbm [shape: bf16[32,16], index: 5, kind: input, shape index: {}]   ;;  %s1248_s6 = inlined_call_operand.hbm [shape: f32[1,16], index: 6, kind: input, shape index: {}]   ;;  %s1249_s7 = inlined_call_operand.hbm [shape: bf16[32,16], index: 7, kind: input, shape index: {}]   ;;  %s1250_s8 = inlined_call_operand.hbm [shape: f32[1,16], index: 8, kind: input, shape index: {}]   ;;  %s1251_s9 = inlined_call_operand.hbm [shape: f32[1,16], index: 9, kind: input, shape index: {}]   ;;  %s1252_s10 = inlined_call_operand.hbm [shape: f32[1,16], index: 10, kind: input, shape index: {}]   ;;  %s1253_s11 = inlined_call_operand.hbm [shape: f32[8,16], index: 11, kind: output, shape index: {0}]   ;;  %s1254_s12 = inlined_call_operand.hbm [shape: f32[1,8,128], index: 12, kind: output, shape index: {1}]  }
   0x1   :  { %19 = vsyncpa [#allocation6], 0 }
   0x2   :  { %20 = vsyncpa [#allocation9], 0 }
   0x3   :  { %21 = vsyncpa [#allocation12], 0 }
   0x4   :  { %22 = vsyncpa [#allocation15], 0 }
   0x5   :  { %23 = vsyncpa [#allocation18], 0 }
   0x6   :  { %24 = vsyncpa [#allocation4], 0 }
   0x7   :  { %25 = vsyncpa [#allocation22], 0  ;;  %s983_s21 = smov [#allocation5]   ;;  %s681_s25 = scalar_lea.hbm %s1243_s1, 512 }
   0x8   :  { %s41_s22 = sshll.u32 %s983_s21, 4  ;;  %p682_p0 = scmp.ne.s32.totalorder %s1243_s1, %s681_s25  ;;  %s42_s22 = int_to_ptr.vmem [resolvable:$true] %s41_s22 }
   0x9   :  { %p685_p1 = scmp.lt.u32.totalorder %s681_s25, %s1243_s1 }
   0xb   :  { %p687_p2 = pnand %p685_p1, %p682_p0 }
   0xd   :  { %690 = shalt.err (!%p687_p2)
}
   0xe   :  { %s691_s30 = scalar_lea.vmem %s42_s22, 512  ;;  %p696_p4 = scmp.lt.s32.totalorder %s42_s22, %s42_s22 }
   0xf   :  { %p692_p3 = scmp.ne.s32.totalorder %s42_s22, %s691_s30  ;;  %p697_p5 = scmp.lt.s32.totalorder %s691_s30, %s691_s30 }
  0x11   :  { %p698_p6 = por %p697_p5, %p696_p4 }
  0x13   :  { %p699_p7 = pnand %p698_p6, %p692_p3 }
  0x15   :  { %702 = shalt.err (!%p699_p7)
}
  0x16   :  { %s984_s13 = smov 64   ;;  %s985_s14 = smov 4  }
  0x17   :  { %47 = dma.hbm_to_vmem [thread:$0]  %s1243_s1, 512, %s42_s22, [#allocation6], %s984_s13, %s984_s13, %s985_s14  }
  0x18   :  { %s986_s17 = smov [#allocation8]   ;;  %s987_s19 = smov [#allocation11]  }
  0x19   :  { %s63_s18 = sshll.u32 %s986_s17, 4  ;;  %s85_s20 = sshll.u32 %s987_s19, 4  ;;  %s64_s18 = int_to_ptr.vmem [resolvable:$true] %s63_s18  ;;  %s86_s20 = int_to_ptr.vmem [resolvable:$true] %s85_s20 }
  0x1a   :  { %s703_s24 = scalar_lea.hbm %s1245_s3, 256 }
  0x1b   :  { %p704_p8 = scmp.ne.s32.totalorder %s1245_s3, %s703_s24  ;;  %p707_p9 = scmp.lt.u32.totalorder %s703_s24, %s1245_s3 }
  0x1d   :  { %p709_p10 = pnand %p707_p9, %p704_p8 }
  0x1f   :  { %712 = shalt.err (!%p709_p10)
}
  0x20   :  { %s713_s1 = scalar_lea.vmem %s64_s18, 256  ;;  %p718_p12 = scmp.lt.s32.totalorder %s64_s18, %s64_s18 }
  0x21   :  { %p714_p11 = scmp.ne.s32.totalorder %s64_s18, %s713_s1  ;;  %p719_p13 = scmp.lt.s32.totalorder %s713_s1, %s713_s1 }
  0x23   :  { %p720_p0 = por %p719_p13, %p718_p12 }
  0x25   :  { %p721_p1 = pnand %p720_p0, %p714_p11 }
  0x27   :  { %724 = shalt.err (!%p721_p1)
}
  0x28   :  { %69 = dma.hbm_to_vmem [thread:$0]  %s1245_s3, 256, %s64_s18, [#allocation9], %s984_s13, %s984_s13, %s985_s14  }
  0x29   :  { %s725_s16 = scalar_lea.hbm %s1247_s5, 256 }
  0x2a   :  { %p726_p2 = scmp.ne.s32.totalorder %s1247_s5, %s725_s16  ;;  %p729_p3 = scmp.lt.u32.totalorder %s725_s16, %s1247_s5 }
  0x2c   :  { %p731_p4 = pnand %p729_p3, %p726_p2 }
  0x2e   :  { %734 = shalt.err (!%p731_p4)
}
  0x2f   :  { %s735_s24 = scalar_lea.vmem %s86_s20, 256  ;;  %p740_p6 = scmp.lt.s32.totalorder %s86_s20, %s86_s20 }
  0x30   :  { %p736_p5 = scmp.ne.s32.totalorder %s86_s20, %s735_s24  ;;  %p741_p7 = scmp.lt.s32.totalorder %s735_s24, %s735_s24 }
  0x32   :  { %p742_p8 = por %p741_p7, %p740_p6 }
  0x34   :  { %p743_p9 = pnand %p742_p8, %p736_p5 }
  0x36   :  { %746 = shalt.err (!%p743_p9)
}
  0x37   :  { %91 = dma.hbm_to_vmem [thread:$0]  %s1247_s5, 256, %s86_s20, [#allocation12], %s984_s13, %s984_s13, %s985_s14  }
  0x38   :  { %s988_s25 = smov [#allocation14]   ;;  %s989_s27 = smov [#allocation17]  }
  0x39   :  { %s107_s26 = sshll.u32 %s988_s25, 4  ;;  %s130_s28 = sshll.u32 %s989_s27, 4  ;;  %s108_s26 = int_to_ptr.vmem [resolvable:$true] %s107_s26  ;;  %s131_s28 = int_to_ptr.vmem [resolvable:$true] %s130_s28 }
  0x3a   :  { %s747_s29 = scalar_lea.hbm %s1249_s7, 256 }
  0x3b   :  { %p748_p10 = scmp.ne.s32.totalorder %s1249_s7, %s747_s29  ;;  %p751_p11 = scmp.lt.u32.totalorder %s747_s29, %s1249_s7 }
  0x3d   :  { %p753_p12 = pnand %p751_p11, %p748_p10 }
  0x3f   :  { %756 = shalt.err (!%p753_p12)
}
  0x40   :  { %s757_s5 = scalar_lea.vmem %s108_s26, 256  ;;  %p762_p0 = scmp.lt.s32.totalorder %s108_s26, %s108_s26 }
  0x41   :  { %p758_p13 = scmp.ne.s32.totalorder %s108_s26, %s757_s5  ;;  %p763_p1 = scmp.lt.s32.totalorder %s757_s5, %s757_s5 }
  0x43   :  { %p764_p2 = por %p763_p1, %p762_p0 }
  0x45   :  { %p765_p3 = pnand %p764_p2, %p758_p13 }
  0x47   :  { %768 = shalt.err (!%p765_p3)
}
  0x48   :  { %113 = dma.hbm_to_vmem [thread:$0]  %s1249_s7, 256, %s108_s26, [#allocation15], %s984_s13, %s984_s13, %s985_s14  }
  0x49   :  { %s769_s24 = scalar_lea.hbm %s1251_s9, 16 }
  0x4a   :  { %p770_p4 = scmp.ne.s32.totalorder %s1251_s9, %s769_s24  ;;  %p773_p5 = scmp.lt.u32.totalorder %s769_s24, %s1251_s9 }
  0x4c   :  { %p775_p6 = pnand %p773_p5, %p770_p4 }
  0x4e   :  { %778 = shalt.err (!%p775_p6)
}
  0x4f   :  { %s779_s1 = scalar_lea.vmem %s131_s28, 16  ;;  %s783_s22 = scalar_lea.vmem %s131_s28, 32 }
  0x50   :  { %p780_p7 = scmp.ne.s32.totalorder %s131_s28, %s779_s1  ;;  %p784_p8 = scmp.lt.s32.totalorder %s131_s28, %s131_s28 }
  0x51   :  { %p785_p9 = scmp.lt.s32.totalorder %s783_s22, %s779_s1 }
  0x53   :  { %p786_p10 = por %p785_p9, %p784_p8 }
  0x55   :  { %p787_p11 = pnand %p786_p10, %p780_p7 }
  0x57   :  { %790 = shalt.err (!%p787_p11)
}
  0x58   :  { %133 = dma.hbm_to_vmem [thread:$0]  %s1251_s9, 16, %s131_s28, [#allocation18]  }
  0x59   :  { %s990_s14 = smov [#allocation2]   ;;  %s991_s29 = smov [#allocation7]  }
  0x5a   :  { %s32_s26 = sshll.u32 %s990_s14, 4  ;;  %s54_s30 = sshll.u32 %s991_s29, 4  ;;  %s33_s26 = int_to_ptr.vmem [resolvable:$true] %s32_s26  ;;  %s55_s30 = int_to_ptr.vmem [resolvable:$true] %s54_s30 }
  0x5b   :  { %s791_s17 = scalar_lea.hbm %s1242_s0, 128 }
  0x5c   :  { %p792_p12 = scmp.ne.s32.totalorder %s1242_s0, %s791_s17  ;;  %p795_p13 = scmp.lt.u32.totalorder %s791_s17, %s1242_s0 }
  0x5e   :  { %p797_p0 = pnand %p795_p13, %p792_p12 }
  0x60   :  { %800 = shalt.err (!%p797_p0)
}
  0x61   :  { %s801_s9 = scalar_lea.vmem %s33_s26, 128  ;;  %p806_p2 = scmp.lt.s32.totalorder %s33_s26, %s33_s26 }
  0x62   :  { %p802_p1 = scmp.ne.s32.totalorder %s33_s26, %s801_s9  ;;  %p807_p3 = scmp.lt.s32.totalorder %s801_s9, %s801_s9 }
  0x64   :  { %p808_p4 = por %p807_p3, %p806_p2 }
  0x66   :  { %p809_p5 = pnand %p808_p4, %p802_p1 }
  0x68   :  { %812 = shalt.err (!%p809_p5)
}
  0x69   :  { %35 = dma.hbm_to_vmem [thread:$0]  %s1242_s0, 128, %s33_s26, [#allocation3]  }
  0x6a   :  { %s813_s18 = scalar_lea.hbm %s1244_s2, 16 }
  0x6b   :  { %p814_p6 = scmp.ne.s32.totalorder %s1244_s2, %s813_s18  ;;  %p817_p7 = scmp.lt.u32.totalorder %s813_s18, %s1244_s2 }
  0x6d   :  { %p819_p8 = pnand %p817_p7, %p814_p6 }
  0x6f   :  { %822 = shalt.err (!%p819_p8)
}
  0x70   :  { %s823_s7 = scalar_lea.vmem %s55_s30, 16  ;;  %s827_s13 = scalar_lea.vmem %s55_s30, 32 }
  0x71   :  { %p824_p9 = scmp.ne.s32.totalorder %s55_s30, %s823_s7  ;;  %p828_p10 = scmp.lt.s32.totalorder %s55_s30, %s55_s30 }
  0x72   :  { %p829_p11 = scmp.lt.s32.totalorder %s827_s13, %s823_s7 }
  0x74   :  { %p830_p12 = por %p829_p11, %p828_p10 }
  0x76   :  { %p831_p13 = pnand %p830_p12, %p824_p9 }
  0x78   :  { %834 = shalt.err (!%p831_p13)
}
  0x79   :  { %57 = dma.hbm_to_vmem [thread:$0]  %s1244_s2, 16, %s55_s30, [#allocation6]  }
  0x7a   :  { %s992_s26 = smov [#allocation10]   ;;  %s993_s15 = smov [#allocation13]  }
  0x7b   :  { %s76_s29 = sshll.u32 %s992_s26, 4  ;;  %s98_s16 = sshll.u32 %s993_s15, 4  ;;  %s77_s29 = int_to_ptr.vmem [resolvable:$true] %s76_s29  ;;  %s99_s16 = int_to_ptr.vmem [resolvable:$true] %s98_s16 }
  0x7c   :  { %s835_s20 = scalar_lea.hbm %s1246_s4, 16 }
  0x7d   :  { %p836_p0 = scmp.ne.s32.totalorder %s1246_s4, %s835_s20  ;;  %p839_p1 = scmp.lt.u32.totalorder %s835_s20, %s1246_s4 }
  0x7f   :  { %p841_p2 = pnand %p839_p1, %p836_p0 }
  0x81   :  { %844 = shalt.err (!%p841_p2)
}
  0x82   :  { %s845_s2 = scalar_lea.vmem %s77_s29, 16  ;;  %s849_s30 = scalar_lea.vmem %s77_s29, 32 }
  0x83   :  { %p846_p3 = scmp.ne.s32.totalorder %s77_s29, %s845_s2  ;;  %p850_p4 = scmp.lt.s32.totalorder %s77_s29, %s77_s29 }
  0x84   :  { %p851_p5 = scmp.lt.s32.totalorder %s849_s30, %s845_s2 }
  0x86   :  { %p852_p6 = por %p851_p5, %p850_p4 }
  0x88   :  { %p853_p7 = pnand %p852_p6, %p846_p3 }
  0x8a   :  { %856 = shalt.err (!%p853_p7)
}
  0x8b   :  { %79 = dma.hbm_to_vmem [thread:$0]  %s1246_s4, 16, %s77_s29, [#allocation9]  }
  0x8c   :  { %s857_s25 = scalar_lea.hbm %s1248_s6, 16 }
  0x8d   :  { %p858_p8 = scmp.ne.s32.totalorder %s1248_s6, %s857_s25  ;;  %p861_p9 = scmp.lt.u32.totalorder %s857_s25, %s1248_s6 }
  0x8f   :  { %p863_p10 = pnand %p861_p9, %p858_p8 }
  0x91   :  { %866 = shalt.err (!%p863_p10)
}
  0x92   :  { %s867_s13 = scalar_lea.vmem %s99_s16, 16  ;;  %s871_s0 = scalar_lea.vmem %s99_s16, 32 }
  0x93   :  { %p868_p11 = scmp.ne.s32.totalorder %s99_s16, %s867_s13  ;;  %p872_p12 = scmp.lt.s32.totalorder %s99_s16, %s99_s16 }
  0x94   :  { %p873_p13 = scmp.lt.s32.totalorder %s871_s0, %s867_s13 }
  0x96   :  { %p874_p0 = por %p873_p13, %p872_p12 }
  0x98   :  { %p875_p1 = pnand %p874_p0, %p868_p11 }
  0x9a   :  { %878 = shalt.err (!%p875_p1)
}
  0x9b   :  { %101 = dma.hbm_to_vmem [thread:$0]  %s1248_s6, 16, %s99_s16, [#allocation12]  }
  0x9c   :  { %s994_s26 = smov [#allocation16]   ;;  %s995_s15 = smov [#allocation19]  }
  0x9d   :  { %s120_s29 = sshll.u32 %s994_s26, 4  ;;  %s140_s17 = sshll.u32 %s995_s15, 4  ;;  %s121_s29 = int_to_ptr.vmem [resolvable:$true] %s120_s29  ;;  %s141_s17 = int_to_ptr.vmem [resolvable:$true] %s140_s17 }
  0x9e   :  { %s879_s19 = scalar_lea.hbm %s1250_s8, 16 }
  0x9f   :  { %p880_p2 = scmp.ne.s32.totalorder %s1250_s8, %s879_s19  ;;  %p883_p3 = scmp.lt.u32.totalorder %s879_s19, %s1250_s8 }
  0xa1   :  { %p885_p4 = pnand %p883_p3, %p880_p2 }
  0xa3   :  { %888 = shalt.err (!%p885_p4)
}
  0xa4   :  { %s889_s6 = scalar_lea.vmem %s121_s29, 16  ;;  %s893_s16 = scalar_lea.vmem %s121_s29, 32 }
  0xa5   :  { %p890_p5 = scmp.ne.s32.totalorder %s121_s29, %s889_s6  ;;  %p894_p6 = scmp.lt.s32.totalorder %s121_s29, %s121_s29 }
  0xa6   :  { %p895_p7 = scmp.lt.s32.totalorder %s893_s16, %s889_s6 }
  0xa8   :  { %p896_p8 = por %p895_p7, %p894_p6 }
  0xaa   :  { %p897_p9 = pnand %p896_p8, %p890_p5 }
  0xac   :  { %900 = shalt.err (!%p897_p9)
}
  0xad   :  { %123 = dma.hbm_to_vmem [thread:$0]  %s1250_s8, 16, %s121_s29, [#allocation15]  }
  0xae   :  { %s901_s18 = scalar_lea.hbm %s1252_s10, 16 }
  0xaf   :  { %p902_p10 = scmp.ne.s32.totalorder %s1252_s10, %s901_s18  ;;  %p905_p11 = scmp.lt.u32.totalorder %s901_s18, %s1252_s10 }
  0xb1   :  { %p907_p12 = pnand %p905_p11, %p902_p10 }
  0xb3   :  { %910 = shalt.err (!%p907_p12)
}
  0xb4   :  { %s911_s7 = scalar_lea.vmem %s141_s17, 16  ;;  %s915_s13 = scalar_lea.vmem %s141_s17, 32 }
  0xb5   :  { %p912_p13 = scmp.ne.s32.totalorder %s141_s17, %s911_s7  ;;  %p916_p0 = scmp.lt.s32.totalorder %s141_s17, %s141_s17 }
  0xb6   :  { %p917_p1 = scmp.lt.s32.totalorder %s915_s13, %s911_s7 }
  0xb8   :  { %p918_p2 = por %p917_p1, %p916_p0 }
  0xba   :  { %p919_p3 = pnand %p918_p2, %p912_p13 }
  0xbc   :  { %922 = shalt.err (!%p919_p3)
}
  0xbd   :  { %143 = dma.hbm_to_vmem [thread:$0]  %s1252_s10, 16, %s141_s17, [#allocation18]  }
  0xbe   :  { %967 = dma.done.wait [#allocation3], 128  }
  0xbf   :  { %968 = vsyncadd [#allocation3], 4294967168 }
  0xc0   :  { %969 = dma.done.wait [#allocation6], 528  }
  0xc1   :  { %970 = vsyncadd [#allocation6], 4294966768 }
  0xc2   :  { %971 = dma.done.wait [#allocation9], 272  }
  0xc3   :  { %972 = vsyncadd [#allocation9], 4294967024 }
  0xc4   :  { %973 = dma.done.wait [#allocation12], 272  }
  0xc5   :  { %974 = vsyncadd [#allocation12], 4294967024 }
  0xc6   :  { %975 = dma.done.wait [#allocation15], 272  }
  0xc7   :  { %976 = vsyncadd [#allocation15], 4294967024 }
  0xc8   :  { %977 = dma.done.wait [#allocation18], 32  }
  0xc9   :  { %978 = vsyncadd [#allocation18], 4294967264  ;;  %v996_v0 = vmov 0.0   ;;  %vm997_vm0 = vmmov 0   ;;  %v657_v1 = vld [vmem:[#allocation5] sm:$0xff]   ;;  %v658_v2 = vld [vmem:[#allocation5 + $0x8] sm:$0xff]   ;;  %v493_v45 = vlaneseq }
  0xca   :  { %602 = vmatprep.subr.bf16.mxu0 %v996_v0  ;;  %610 = vmatprep.mubr.msk.bf16.mxu0 %vm997_vm0, %v996_v0  ;;  %v659_v3 = vld [vmem:[#allocation5 + $0x10] sm:$0xff]   ;;  %v660_v4 = vld [vmem:[#allocation5 + $0x18] sm:$0xff]   ;;  %vm219_vm1 = vcmask 523264   ;;  %v661_v7 = vld [vmem:[#allocation8] sm:$0xff]   ;;  %vm296_vm2 = vcmask 261120   ;;  %vm513_vm3 = vcmask 130048  }
  0xcb   :  { %614 = vmatprep.subr.bf16.mxu1 %v996_v0  ;;  %618 = vmatprep.mubr.msk.bf16.mxu1 %vm997_vm0, %v996_v0  ;;  %v178_v5 = vld [vmem:[#allocation2] sm:$0xff]  ;;  %v662_v8 = vld [vmem:[#allocation8 + $0x8] sm:$0xff]   ;;  %v568_v9 = vld [vmem:[#allocation7] ss:$0 sm:$0xff]  ;;  %v494_v46 = vshrl.u32 %v493_v45, 7  ;;  %vm519_vm4 = vcmask 7168  }
  0xcc   :  { %603 = vmatpush3.bf16.msra.mxu0 %v657_v1  ;;  %v179_v6 = vpack.c.bf16 %v178_v5, %v178_v5  ;;  %615 = vmatpush3.bf16.msra.mxu1 %v661_v7  ;;  %v663_v25 = vld [vmem:[#allocation14] sm:$0xff]   ;;  %v664_v26 = vld [vmem:[#allocation11] sm:$0xff]   ;;  %v666_v28 = vld [vmem:[#allocation11 + $0x8] sm:$0xff]   ;;  %s998_s10 = smov [#allocation20]  }
  0xcd   :  { %604 = vmatprep.subr.bf16.mxu0 %v996_v0  ;;  %616 = vmatprep.subr.bf16.mxu1 %v996_v0  ;;  %v665_v27 = vld [vmem:[#allocation14 + $0x8] sm:$0xff]   ;;  %v495_v47 = vsub.s32 0, %v494_v46  ;;  %v578_v48 = vld [vmem:[#allocation13] ss:$0 sm:$0xff]  ;;  %v482_v49 = vld [vmem:[#allocation19] sm:$0x1] }
  0xce   :  { %v574_v29 = vld [vmem:[#allocation10] ss:$0 sm:$0xff]  ;;  %v582_v50 = vld [vmem:[#allocation16] ss:$0 sm:$0xff]  ;;  %v586_v1 = vld [vmem:[#allocation17] ss:$0 sm:$0xff] }
  0xcf   :  { %v496_v54 = vrot.slane %v482_v49, %v495_v47  ;;  %s540_s4 = sshll.u32 %s998_s10, 4  ;;  %s541_s4 = int_to_ptr.vmem [resolvable:$true] %s540_s4 }
  0xd0   :  { %605 = vmatpush3.bf16.msra.mxu0 %v658_v2  ;;  %617 = vmatpush3.bf16.msra.mxu1 %v662_v8  ;;  %s923_s14 = scalar_lea.vmem %s541_s4, 128  ;;  %p928_p5 = scmp.lt.s32.totalorder %s541_s4, %s541_s4 }
  0xd1   :  { %606 = vmatprep.subr.bf16.mxu0 %v996_v0  ;;  %622 = vmatprep.subr.bf16.mxu1 %v996_v0  ;;  %p924_p4 = scmp.ne.s32.totalorder %s541_s4, %s923_s14  ;;  %p929_p6 = scmp.lt.s32.totalorder %s923_s14, %s923_s14 }
  0xd3   :  { %p930_p7 = por %p929_p6, %p928_p5 }
  0xd4   :  { %607 = vmatpush3.bf16.msra.mxu0 %v659_v3 }
  0xd5   :  { %608 = vmatprep.subr.bf16.mxu0 %v996_v0  ;;  %p931_p8 = pnand %p930_p7, %p924_p4 }
  0xd8   :  { %609 = vmatpush3.bf16.msra.mxu0 %v660_v4 }
  0xd9   :  { %630 = vmatprep.subr.bf16.mxu0 %v996_v0 }
  0xdb   :  { %611 = vmatmul.mubr.msk.bf16.vlgmr.msra.gmra.mrb[0].mxu0 %vm219_vm1, %v179_v6 }
  0xdc   :  { %634 = vmatprep.mubr.msk.bf16.mxu0 %vm997_vm0, %v996_v0  ;;  %631 = vmatpush3.bf16.msra.mxu0 %v663_v25 }
  0xdd   :  { %632 = vmatprep.subr.bf16.mxu0 %v996_v0 }
  0xe0   :  { %633 = vmatpush3.bf16.msra.mxu0 %v665_v27 }
 0x1ae   :  { %v257_v10 = vpop.f32.mrb[0].mxu0 }
 0x1af   :  { %v258_v11 = vadd.f32 %v568_v9, %v257_v10  ;;  %v612_v12 = vpop.f32.mrb[1].mxu0 }
 0x1b0   :  { %v260_v13 = vpop.f32.mrb[2].mxu0 }
 0x1b1   :  { %v263_v14 = vand.u32 2147483647, %v258_v11  ;;  %v613_v15 = vpop.f32.mrb[3].mxu0  ;;  %v270_v22 = vmax.f32 %v258_v11, 0.0 }
 0x1b3   :  { %v264_v16 = vsub.f32 0.0, %v263_v14 }
 0x1b5   :  { %v265_v17 = vmul.f32 1.442695, %v264_v16 }
 0x1b7   :  { %667 = vpow2.f32 %v265_v17 }
 0x1c1   :  { %v668_v18 = vpop.eup %667 }
 0x1c2   :  { %v267_v19 = vadd.f32 1.0, %v668_v18 }
 0x1c4   :  { %669 = vlog2.f32 %v267_v19 }
 0x1ce   :  { %v670_v20 = vpop.eup %669 }
 0x1cf   :  { %v269_v21 = vmul.f32 0.6931472, %v670_v20 }
 0x1d1   :  { %v271_v23 = vadd.f32 %v270_v22, %v269_v21 }
 0x1d3   :  { %v272_v24 = vpack.c.bf16 %v271_v23, %v271_v23 }
 0x1d5   :  { %619 = vmatmul.mubr.msk.bf16.vlgmr.msra.gmra.mrb[0].mxu1 %vm296_vm2, %v272_v24 }
 0x1d6   :  { %626 = vmatprep.mubr.msk.bf16.mxu1 %vm997_vm0, %v996_v0  ;;  %623 = vmatpush3.bf16.msra.mxu1 %v664_v26 }
 0x1d7   :  { %624 = vmatprep.subr.bf16.mxu1 %v996_v0 }
 0x1da   :  { %625 = vmatpush3.bf16.msra.mxu1 %v666_v28 }
 0x2a8   :  { %v334_v30 = vpop.f32.mrb[0].mxu1 }
 0x2a9   :  { %v335_v31 = vadd.f32 %v574_v29, %v334_v30  ;;  %v620_v32 = vpop.f32.mrb[1].mxu1 }
 0x2aa   :  { %v337_v33 = vpop.f32.mrb[2].mxu1 }
 0x2ab   :  { %v340_v34 = vand.u32 2147483647, %v335_v31  ;;  %v621_v35 = vpop.f32.mrb[3].mxu1  ;;  %v347_v42 = vmax.f32 %v335_v31, 0.0 }
 0x2ad   :  { %v341_v36 = vsub.f32 0.0, %v340_v34 }
 0x2af   :  { %v342_v37 = vmul.f32 1.442695, %v341_v36 }
 0x2b1   :  { %671 = vpow2.f32 %v342_v37 }
 0x2bb   :  { %v672_v38 = vpop.eup %671 }
 0x2bc   :  { %v344_v39 = vadd.f32 1.0, %v672_v38 }
 0x2be   :  { %673 = vlog2.f32 %v344_v39 }
 0x2bf   :  { %675 = vlog2.f32 %v482_v49 }
 0x2c0   :  { %677 = vrcp.f32 %v496_v54 }
 0x2c8   :  { %v674_v40 = vpop.eup %673 }
 0x2c9   :  { %v346_v41 = vmul.f32 0.6931472, %v674_v40  ;;  %v676_v3 = vpop.eup %675 }
 0x2ca   :  { %v504_v5 = vmul.f32 0.6931472, %v676_v3  ;;  %v678_v6 = vpop.eup %677 }
 0x2cb   :  { %v348_v43 = vadd.f32 %v347_v42, %v346_v41 }
 0x2cc   :  { %v509_v10 = vrot.slane %v504_v5, %v495_v47 }
 0x2cd   :  { %v349_v44 = vpack.c.bf16 %v348_v43, %v348_v43 }
 0x2cf   :  { %627 = vmatmul.mubr.msk.bf16.vlgmr.msra.gmra.mrb[4].mxu1 %vm296_vm2, %v349_v44  ;;  %635 = vmatmul.mubr.msk.bf16.vlgmr.msra.gmra.mrb[4].mxu0 %vm296_vm2, %v349_v44 }
 0x3a2   :  { %v410_v51 = vpop.f32.mrb[4].mxu1  ;;  %v474_v52 = vpop.f32.mrb[4].mxu0 }
 0x3a3   :  { %v411_v53 = vadd.f32 %v578_v48, %v410_v51  ;;  %v475_v55 = vadd.f32 %v582_v50, %v474_v52  ;;  %v628_v56 = vpop.f32.mrb[5].mxu1  ;;  %v636_v57 = vpop.f32.mrb[5].mxu0 }
 0x3a4   :  { %v413_v58 = vpop.f32.mrb[6].mxu1  ;;  %v477_v59 = vpop.f32.mrb[6].mxu0 }
 0x3a5   :  { %v416_v60 = vmul.f32 0.999995, %v411_v53  ;;  %v480_v61 = vmul.f32 0.999995, %v475_v55  ;;  %v629_v62 = vpop.f32.mrb[7].mxu1  ;;  %v637_v63 = vpop.f32.mrb[7].mxu0 }
 0x3a7   :  { %v483_v0 = vmul.f32 1.442695, %v480_v61  ;;  %533 = vst.msk [vmem:[#allocation20] sm:$0xff] %vm513_vm3, %v416_v60  ;;  %v491_v2 = vsub.f32 %v416_v60, %v586_v1 }
 0x3a9   :  { %679 = vpow2.f32 %v483_v0  ;;  %v500_v4 = vmul.f32 %v491_v2, %v491_v2 }
 0x3ab   :  { %v501_v8 = vmul.f32 %v678_v6, %v500_v4 }
 0x3b3   :  { %v680_v7 = vpop.eup %679 }
 0x3b4   :  { %v499_v9 = vmul.f32 %v680_v7, %v678_v6 }
 0x3b6   :  { %v502_v11 = vadd.f32 %v501_v8, %v499_v9 }
 0x3b8   :  { %v511_v12 = vadd.f32 %v509_v10, %v502_v11 }
 0x3ba   :  { %v512_v13 = vsub.f32 %v511_v12, %v480_v61 }
 0x3bc   :  { %v514_v14 = vsel %vm513_vm3, %v512_v13, 0.0 }
 0x3bd   :  { %515 = vadd.xlane.f32.xlu0 %v514_v14 }
 0x44a   :  { %v516_v15 = vpop.xlane.xlu0 %515 }
 0x44b   :  { %v587_v16 = vadd.f32 -16.0, %v516_v15 }
 0x44d   :  { %v518_v17 = vmul.f32 0.5, %v587_v16 }
 0x44f   :  { %v520_v18 = vsel %vm519_vm4, %v518_v17, 0.0 }
 0x450   :  { %521 = vadd.xlane.f32.xlu0 %v520_v18 }
 0x451   :  { %934 = shalt.err (!%p931_p8)
}
 0x452   :  { %s935_s15 = scalar_lea.hbm %s1253_s11, 128 }
 0x453   :  { %p936_p9 = scmp.ne.s32.totalorder %s1253_s11, %s935_s15  ;;  %p939_p10 = scmp.lt.u32.totalorder %s935_s15, %s1253_s11 }
 0x455   :  { %p941_p11 = pnand %p939_p10, %p936_p9 }
 0x457   :  { %944 = shalt.err (!%p941_p11)
}
 0x458   :  { %543 = dma.vmem_to_hbm [thread:$0]  %s541_s4, 128, %s1253_s11, [#allocation4]  }
 0x459   :  { %s999_s28 = smov [#allocation21]  }
 0x45a   :  { %s550_s2 = sshll.u32 %s999_s28, 4  ;;  %s551_s2 = int_to_ptr.vmem [resolvable:$true] %s550_s2 }
 0x45b   :  { %s945_s16 = scalar_lea.vmem %s551_s2, 128  ;;  %p950_p13 = scmp.lt.s32.totalorder %s551_s2, %s551_s2 }
 0x45c   :  { %p946_p12 = scmp.ne.s32.totalorder %s551_s2, %s945_s16  ;;  %p951_p0 = scmp.lt.s32.totalorder %s945_s16, %s945_s16 }
 0x45e   :  { %p952_p1 = por %p951_p0, %p950_p13 }
 0x460   :  { %p953_p2 = pnand %p952_p1, %p946_p12 }
 0x4dd   :  { %v522_v19 = vpop.xlane.xlu0 %521 }
 0x4de   :  { %v523_v20 = vrot.slane %v522_v19, 4 }
 0x4e0   :  { %v524_v21 = vadd.f32 %v523_v20, %v522_v19 }
 0x4e2   :  { %v525_v22 = vrot.slane %v524_v21, 2 }
 0x4e4   :  { %v526_v23 = vadd.f32 %v525_v22, %v524_v21 }
 0x4e6   :  { %v527_v24 = vrot.slane %v526_v23, 1 }
 0x4e8   :  { %v528_v25 = vadd.f32 %v527_v24, %v526_v23 }
 0x4ea   :  { %638 = vpush %v528_v25 }
 0x51b   :  { %s639_s6 = spop %638 }
 0x51c   :  { %v530_v26 = vstv %s639_s6 }
 0x51d   :  { %532 = vst [vmem:[#allocation21] sm:$0xff] %v530_v26 }
 0x51e   :  { %956 = shalt.err (!%p953_p2)
}
 0x51f   :  { %s957_s23 = scalar_lea.hbm %s1254_s12, 128 }
 0x520   :  { %p958_p3 = scmp.ne.s32.totalorder %s1254_s12, %s957_s23  ;;  %p961_p4 = scmp.lt.u32.totalorder %s957_s23, %s1254_s12 }
 0x522   :  { %p963_p5 = pnand %p961_p4, %p958_p3 }
 0x524   :  { %966 = shalt.err (!%p963_p5)
}
 0x525   :  { %553 = dma.vmem_to_hbm [thread:$0]  %s551_s2, 128, %s1254_s12, [#allocation22]  }
 0x526   :  { %979 = dma.done.wait [#allocation4], 128  }
 0x527   :  { %980 = vsyncadd [#allocation4], 4294967168 }
 0x528   :  { %981 = dma.done.wait [#allocation22], 128  }
 0x529   :  { %982 = vsyncadd [#allocation22], 4294967168 }
 0x52a   :  { %560 = vsyncpa [#allocation3], 1 }
 0x52b   :  { %561 = vsyncpa [#allocation6], 1 }
 0x52c   :  { %562 = vsyncpa [#allocation9], 1 }
 0x52d   :  { %563 = vsyncpa [#allocation12], 1 }
 0x52e   :  { %564 = vsyncpa [#allocation15], 1 }
 0x52f   :  { %565 = vsyncpa [#allocation18], 1 }
 0x530   :  { %566 = vsyncpa [#allocation4], 1 }
 0x531   :  { %567 = vsyncpa [#allocation22], 1 }

// kernel: _lambda_.4
= control target key start
LH: loop header
LB: loop body
LE: loop exit
PB: predicated region body
PF: predicated region fallthrough
CT: control target
= control target key end

     0   :  { %18 = vsyncpa [#allocation3], 0  ;;  %s1259_s0 = inlined_call_operand.hbm [shape: f32[4,64], index: 0, kind: input, shape index: {}]   ;;  %s1260_s1 = inlined_call_operand.hbm [shape: bf16[64,32], index: 1, kind: input, shape index: {}]   ;;  %s1261_s2 = inlined_call_operand.hbm [shape: f32[1,32], index: 2, kind: input, shape index: {}]   ;;  %s1262_s3 = inlined_call_operand.hbm [shape: bf16[32,32], index: 3, kind: input, shape index: {}]   ;;  %s1263_s4 = inlined_call_operand.hbm [shape: f32[1,32], index: 4, kind: input, shape index: {}]   ;;  %s1264_s5 = inlined_call_operand.hbm [shape: bf16[32,16], index: 5, kind: input, shape index: {}]   ;;  %s1265_s6 = inlined_call_operand.hbm [shape: f32[1,16], index: 6, kind: input, shape index: {}]   ;;  %s1266_s7 = inlined_call_operand.hbm [shape: bf16[32,16], index: 7, kind: input, shape index: {}]   ;;  %s1267_s8 = inlined_call_operand.hbm [shape: f32[1,16], index: 8, kind: input, shape index: {}]   ;;  %s1268_s9 = inlined_call_operand.hbm [shape: f32[1,16], index: 9, kind: input, shape index: {}]   ;;  %s1269_s10 = inlined_call_operand.hbm [shape: f32[1,16], index: 10, kind: input, shape index: {}]   ;;  %s1270_s11 = inlined_call_operand.hbm [shape: f32[4,16], index: 11, kind: output, shape index: {0}]   ;;  %s1271_s12 = inlined_call_operand.hbm [shape: f32[1,8,128], index: 12, kind: output, shape index: {1}]  }
   0x1   :  { %19 = vsyncpa [#allocation6], 0 }
   0x2   :  { %20 = vsyncpa [#allocation9], 0 }
   0x3   :  { %21 = vsyncpa [#allocation12], 0 }
   0x4   :  { %22 = vsyncpa [#allocation15], 0 }
   0x5   :  { %23 = vsyncpa [#allocation18], 0 }
   0x6   :  { %24 = vsyncpa [#allocation4], 0 }
   0x7   :  { %25 = vsyncpa [#allocation22], 0  ;;  %s998_s21 = smov [#allocation5]   ;;  %s696_s25 = scalar_lea.hbm %s1260_s1, 512 }
   0x8   :  { %s41_s22 = sshll.u32 %s998_s21, 4  ;;  %p697_p0 = scmp.ne.s32.totalorder %s1260_s1, %s696_s25  ;;  %s42_s22 = int_to_ptr.vmem [resolvable:$true] %s41_s22 }
   0x9   :  { %p700_p1 = scmp.lt.u32.totalorder %s696_s25, %s1260_s1 }
   0xb   :  { %p702_p2 = pnand %p700_p1, %p697_p0 }
   0xd   :  { %705 = shalt.err (!%p702_p2)
}
   0xe   :  { %s706_s30 = scalar_lea.vmem %s42_s22, 512  ;;  %p711_p4 = scmp.lt.s32.totalorder %s42_s22, %s42_s22 }
   0xf   :  { %p707_p3 = scmp.ne.s32.totalorder %s42_s22, %s706_s30  ;;  %p712_p5 = scmp.lt.s32.totalorder %s706_s30, %s706_s30 }
  0x11   :  { %p713_p6 = por %p712_p5, %p711_p4 }
  0x13   :  { %p714_p7 = pnand %p713_p6, %p707_p3 }
  0x15   :  { %717 = shalt.err (!%p714_p7)
}
  0x16   :  { %s999_s13 = smov 64   ;;  %s1000_s14 = smov 4  }
  0x17   :  { %47 = dma.hbm_to_vmem [thread:$0]  %s1260_s1, 512, %s42_s22, [#allocation6], %s999_s13, %s999_s13, %s1000_s14  }
  0x18   :  { %s1001_s17 = smov [#allocation8]   ;;  %s1002_s19 = smov [#allocation11]  }
  0x19   :  { %s63_s18 = sshll.u32 %s1001_s17, 4  ;;  %s85_s20 = sshll.u32 %s1002_s19, 4  ;;  %s64_s18 = int_to_ptr.vmem [resolvable:$true] %s63_s18  ;;  %s86_s20 = int_to_ptr.vmem [resolvable:$true] %s85_s20 }
  0x1a   :  { %s718_s24 = scalar_lea.hbm %s1262_s3, 256 }
  0x1b   :  { %p719_p8 = scmp.ne.s32.totalorder %s1262_s3, %s718_s24  ;;  %p722_p9 = scmp.lt.u32.totalorder %s718_s24, %s1262_s3 }
  0x1d   :  { %p724_p10 = pnand %p722_p9, %p719_p8 }
  0x1f   :  { %727 = shalt.err (!%p724_p10)
}
  0x20   :  { %s728_s1 = scalar_lea.vmem %s64_s18, 256  ;;  %p733_p12 = scmp.lt.s32.totalorder %s64_s18, %s64_s18 }
  0x21   :  { %p729_p11 = scmp.ne.s32.totalorder %s64_s18, %s728_s1  ;;  %p734_p13 = scmp.lt.s32.totalorder %s728_s1, %s728_s1 }
  0x23   :  { %p735_p0 = por %p734_p13, %p733_p12 }
  0x25   :  { %p736_p1 = pnand %p735_p0, %p729_p11 }
  0x27   :  { %739 = shalt.err (!%p736_p1)
}
  0x28   :  { %69 = dma.hbm_to_vmem [thread:$0]  %s1262_s3, 256, %s64_s18, [#allocation9], %s999_s13, %s999_s13, %s1000_s14  }
  0x29   :  { %s740_s16 = scalar_lea.hbm %s1264_s5, 256 }
  0x2a   :  { %p741_p2 = scmp.ne.s32.totalorder %s1264_s5, %s740_s16  ;;  %p744_p3 = scmp.lt.u32.totalorder %s740_s16, %s1264_s5 }
  0x2c   :  { %p746_p4 = pnand %p744_p3, %p741_p2 }
  0x2e   :  { %749 = shalt.err (!%p746_p4)
}
  0x2f   :  { %s750_s24 = scalar_lea.vmem %s86_s20, 256  ;;  %p755_p6 = scmp.lt.s32.totalorder %s86_s20, %s86_s20 }
  0x30   :  { %p751_p5 = scmp.ne.s32.totalorder %s86_s20, %s750_s24  ;;  %p756_p7 = scmp.lt.s32.totalorder %s750_s24, %s750_s24 }
  0x32   :  { %p757_p8 = por %p756_p7, %p755_p6 }
  0x34   :  { %p758_p9 = pnand %p757_p8, %p751_p5 }
  0x36   :  { %761 = shalt.err (!%p758_p9)
}
  0x37   :  { %91 = dma.hbm_to_vmem [thread:$0]  %s1264_s5, 256, %s86_s20, [#allocation12], %s999_s13, %s999_s13, %s1000_s14  }
  0x38   :  { %s1003_s25 = smov [#allocation14]   ;;  %s1004_s27 = smov [#allocation17]  }
  0x39   :  { %s107_s26 = sshll.u32 %s1003_s25, 4  ;;  %s130_s28 = sshll.u32 %s1004_s27, 4  ;;  %s108_s26 = int_to_ptr.vmem [resolvable:$true] %s107_s26  ;;  %s131_s28 = int_to_ptr.vmem [resolvable:$true] %s130_s28 }
  0x3a   :  { %s762_s29 = scalar_lea.hbm %s1266_s7, 256 }
  0x3b   :  { %p763_p10 = scmp.ne.s32.totalorder %s1266_s7, %s762_s29  ;;  %p766_p11 = scmp.lt.u32.totalorder %s762_s29, %s1266_s7 }
  0x3d   :  { %p768_p12 = pnand %p766_p11, %p763_p10 }
  0x3f   :  { %771 = shalt.err (!%p768_p12)
}
  0x40   :  { %s772_s5 = scalar_lea.vmem %s108_s26, 256  ;;  %p777_p0 = scmp.lt.s32.totalorder %s108_s26, %s108_s26 }
  0x41   :  { %p773_p13 = scmp.ne.s32.totalorder %s108_s26, %s772_s5  ;;  %p778_p1 = scmp.lt.s32.totalorder %s772_s5, %s772_s5 }
  0x43   :  { %p779_p2 = por %p778_p1, %p777_p0 }
  0x45   :  { %p780_p3 = pnand %p779_p2, %p773_p13 }
  0x47   :  { %783 = shalt.err (!%p780_p3)
}
  0x48   :  { %113 = dma.hbm_to_vmem [thread:$0]  %s1266_s7, 256, %s108_s26, [#allocation15], %s999_s13, %s999_s13, %s1000_s14  }
  0x49   :  { %s784_s24 = scalar_lea.hbm %s1268_s9, 16 }
  0x4a   :  { %p785_p4 = scmp.ne.s32.totalorder %s1268_s9, %s784_s24  ;;  %p788_p5 = scmp.lt.u32.totalorder %s784_s24, %s1268_s9 }
  0x4c   :  { %p790_p6 = pnand %p788_p5, %p785_p4 }
  0x4e   :  { %793 = shalt.err (!%p790_p6)
}
  0x4f   :  { %s794_s1 = scalar_lea.vmem %s131_s28, 16  ;;  %s798_s22 = scalar_lea.vmem %s131_s28, 32 }
  0x50   :  { %p795_p7 = scmp.ne.s32.totalorder %s131_s28, %s794_s1  ;;  %p799_p8 = scmp.lt.s32.totalorder %s131_s28, %s131_s28 }
  0x51   :  { %p800_p9 = scmp.lt.s32.totalorder %s798_s22, %s794_s1 }
  0x53   :  { %p801_p10 = por %p800_p9, %p799_p8 }
  0x55   :  { %p802_p11 = pnand %p801_p10, %p795_p7 }
  0x57   :  { %805 = shalt.err (!%p802_p11)
}
  0x58   :  { %133 = dma.hbm_to_vmem [thread:$0]  %s1268_s9, 16, %s131_s28, [#allocation18]  }
  0x59   :  { %s1005_s14 = smov [#allocation2]   ;;  %s1006_s29 = smov [#allocation7]  }
  0x5a   :  { %s32_s26 = sshll.u32 %s1005_s14, 4  ;;  %s54_s30 = sshll.u32 %s1006_s29, 4  ;;  %s33_s26 = int_to_ptr.vmem [resolvable:$true] %s32_s26  ;;  %s55_s30 = int_to_ptr.vmem [resolvable:$true] %s54_s30 }
  0x5b   :  { %s806_s17 = scalar_lea.hbm %s1259_s0, 64 }
  0x5c   :  { %p807_p12 = scmp.ne.s32.totalorder %s1259_s0, %s806_s17  ;;  %p810_p13 = scmp.lt.u32.totalorder %s806_s17, %s1259_s0 }
  0x5e   :  { %p812_p0 = pnand %p810_p13, %p807_p12 }
  0x60   :  { %815 = shalt.err (!%p812_p0)
}
  0x61   :  { %s816_s9 = scalar_lea.vmem %s33_s26, 64  ;;  %p821_p2 = scmp.lt.s32.totalorder %s33_s26, %s33_s26 }
  0x62   :  { %p817_p1 = scmp.ne.s32.totalorder %s33_s26, %s816_s9  ;;  %p822_p3 = scmp.lt.s32.totalorder %s816_s9, %s816_s9 }
  0x64   :  { %p823_p4 = por %p822_p3, %p821_p2 }
  0x66   :  { %p824_p5 = pnand %p823_p4, %p817_p1 }
  0x68   :  { %827 = shalt.err (!%p824_p5)
}
  0x69   :  { %35 = dma.hbm_to_vmem [thread:$0]  %s1259_s0, 64, %s33_s26, [#allocation3]  }
  0x6a   :  { %s828_s18 = scalar_lea.hbm %s1261_s2, 16 }
  0x6b   :  { %p829_p6 = scmp.ne.s32.totalorder %s1261_s2, %s828_s18  ;;  %p832_p7 = scmp.lt.u32.totalorder %s828_s18, %s1261_s2 }
  0x6d   :  { %p834_p8 = pnand %p832_p7, %p829_p6 }
  0x6f   :  { %837 = shalt.err (!%p834_p8)
}
  0x70   :  { %s838_s7 = scalar_lea.vmem %s55_s30, 16  ;;  %s842_s13 = scalar_lea.vmem %s55_s30, 32 }
  0x71   :  { %p839_p9 = scmp.ne.s32.totalorder %s55_s30, %s838_s7  ;;  %p843_p10 = scmp.lt.s32.totalorder %s55_s30, %s55_s30 }
  0x72   :  { %p844_p11 = scmp.lt.s32.totalorder %s842_s13, %s838_s7 }
  0x74   :  { %p845_p12 = por %p844_p11, %p843_p10 }
  0x76   :  { %p846_p13 = pnand %p845_p12, %p839_p9 }
  0x78   :  { %849 = shalt.err (!%p846_p13)
}
  0x79   :  { %57 = dma.hbm_to_vmem [thread:$0]  %s1261_s2, 16, %s55_s30, [#allocation6]  }
  0x7a   :  { %s1007_s26 = smov [#allocation10]   ;;  %s1008_s15 = smov [#allocation13]  }
  0x7b   :  { %s76_s29 = sshll.u32 %s1007_s26, 4  ;;  %s98_s16 = sshll.u32 %s1008_s15, 4  ;;  %s77_s29 = int_to_ptr.vmem [resolvable:$true] %s76_s29  ;;  %s99_s16 = int_to_ptr.vmem [resolvable:$true] %s98_s16 }
  0x7c   :  { %s850_s20 = scalar_lea.hbm %s1263_s4, 16 }
  0x7d   :  { %p851_p0 = scmp.ne.s32.totalorder %s1263_s4, %s850_s20  ;;  %p854_p1 = scmp.lt.u32.totalorder %s850_s20, %s1263_s4 }
  0x7f   :  { %p856_p2 = pnand %p854_p1, %p851_p0 }
  0x81   :  { %859 = shalt.err (!%p856_p2)
}
  0x82   :  { %s860_s2 = scalar_lea.vmem %s77_s29, 16  ;;  %s864_s30 = scalar_lea.vmem %s77_s29, 32 }
  0x83   :  { %p861_p3 = scmp.ne.s32.totalorder %s77_s29, %s860_s2  ;;  %p865_p4 = scmp.lt.s32.totalorder %s77_s29, %s77_s29 }
  0x84   :  { %p866_p5 = scmp.lt.s32.totalorder %s864_s30, %s860_s2 }
  0x86   :  { %p867_p6 = por %p866_p5, %p865_p4 }
  0x88   :  { %p868_p7 = pnand %p867_p6, %p861_p3 }
  0x8a   :  { %871 = shalt.err (!%p868_p7)
}
  0x8b   :  { %79 = dma.hbm_to_vmem [thread:$0]  %s1263_s4, 16, %s77_s29, [#allocation9]  }
  0x8c   :  { %s872_s25 = scalar_lea.hbm %s1265_s6, 16 }
  0x8d   :  { %p873_p8 = scmp.ne.s32.totalorder %s1265_s6, %s872_s25  ;;  %p876_p9 = scmp.lt.u32.totalorder %s872_s25, %s1265_s6 }
  0x8f   :  { %p878_p10 = pnand %p876_p9, %p873_p8 }
  0x91   :  { %881 = shalt.err (!%p878_p10)
}
  0x92   :  { %s882_s13 = scalar_lea.vmem %s99_s16, 16  ;;  %s886_s0 = scalar_lea.vmem %s99_s16, 32 }
  0x93   :  { %p883_p11 = scmp.ne.s32.totalorder %s99_s16, %s882_s13  ;;  %p887_p12 = scmp.lt.s32.totalorder %s99_s16, %s99_s16 }
  0x94   :  { %p888_p13 = scmp.lt.s32.totalorder %s886_s0, %s882_s13 }
  0x96   :  { %p889_p0 = por %p888_p13, %p887_p12 }
  0x98   :  { %p890_p1 = pnand %p889_p0, %p883_p11 }
  0x9a   :  { %893 = shalt.err (!%p890_p1)
}
  0x9b   :  { %101 = dma.hbm_to_vmem [thread:$0]  %s1265_s6, 16, %s99_s16, [#allocation12]  }
  0x9c   :  { %s1009_s26 = smov [#allocation16]   ;;  %s1010_s15 = smov [#allocation19]  }
  0x9d   :  { %s120_s29 = sshll.u32 %s1009_s26, 4  ;;  %s140_s17 = sshll.u32 %s1010_s15, 4  ;;  %s121_s29 = int_to_ptr.vmem [resolvable:$true] %s120_s29  ;;  %s141_s17 = int_to_ptr.vmem [resolvable:$true] %s140_s17 }
  0x9e   :  { %s894_s19 = scalar_lea.hbm %s1267_s8, 16 }
  0x9f   :  { %p895_p2 = scmp.ne.s32.totalorder %s1267_s8, %s894_s19  ;;  %p898_p3 = scmp.lt.u32.totalorder %s894_s19, %s1267_s8 }
  0xa1   :  { %p900_p4 = pnand %p898_p3, %p895_p2 }
  0xa3   :  { %903 = shalt.err (!%p900_p4)
}
  0xa4   :  { %s904_s6 = scalar_lea.vmem %s121_s29, 16  ;;  %s908_s16 = scalar_lea.vmem %s121_s29, 32 }
  0xa5   :  { %p905_p5 = scmp.ne.s32.totalorder %s121_s29, %s904_s6  ;;  %p909_p6 = scmp.lt.s32.totalorder %s121_s29, %s121_s29 }
  0xa6   :  { %p910_p7 = scmp.lt.s32.totalorder %s908_s16, %s904_s6 }
  0xa8   :  { %p911_p8 = por %p910_p7, %p909_p6 }
  0xaa   :  { %p912_p9 = pnand %p911_p8, %p905_p5 }
  0xac   :  { %915 = shalt.err (!%p912_p9)
}
  0xad   :  { %123 = dma.hbm_to_vmem [thread:$0]  %s1267_s8, 16, %s121_s29, [#allocation15]  }
  0xae   :  { %s916_s18 = scalar_lea.hbm %s1269_s10, 16 }
  0xaf   :  { %p917_p10 = scmp.ne.s32.totalorder %s1269_s10, %s916_s18  ;;  %p920_p11 = scmp.lt.u32.totalorder %s916_s18, %s1269_s10 }
  0xb1   :  { %p922_p12 = pnand %p920_p11, %p917_p10 }
  0xb3   :  { %925 = shalt.err (!%p922_p12)
}
  0xb4   :  { %s926_s7 = scalar_lea.vmem %s141_s17, 16  ;;  %s930_s13 = scalar_lea.vmem %s141_s17, 32 }
  0xb5   :  { %p927_p13 = scmp.ne.s32.totalorder %s141_s17, %s926_s7  ;;  %p931_p0 = scmp.lt.s32.totalorder %s141_s17, %s141_s17 }
  0xb6   :  { %p932_p1 = scmp.lt.s32.totalorder %s930_s13, %s926_s7 }
  0xb8   :  { %p933_p2 = por %p932_p1, %p931_p0 }
  0xba   :  { %p934_p3 = pnand %p933_p2, %p927_p13 }
  0xbc   :  { %937 = shalt.err (!%p934_p3)
}
  0xbd   :  { %143 = dma.hbm_to_vmem [thread:$0]  %s1269_s10, 16, %s141_s17, [#allocation18]  }
  0xbe   :  { %982 = dma.done.wait [#allocation3], 64  }
  0xbf   :  { %983 = vsyncadd [#allocation3], 4294967232 }
  0xc0   :  { %984 = dma.done.wait [#allocation6], 528  }
  0xc1   :  { %985 = vsyncadd [#allocation6], 4294966768 }
  0xc2   :  { %986 = dma.done.wait [#allocation9], 272  }
  0xc3   :  { %987 = vsyncadd [#allocation9], 4294967024 }
  0xc4   :  { %988 = dma.done.wait [#allocation12], 272  }
  0xc5   :  { %989 = vsyncadd [#allocation12], 4294967024 }
  0xc6   :  { %990 = dma.done.wait [#allocation15], 272  }
  0xc7   :  { %991 = vsyncadd [#allocation15], 4294967024 }
  0xc8   :  { %992 = dma.done.wait [#allocation18], 32  }
  0xc9   :  { %993 = vsyncadd [#allocation18], 4294967264  ;;  %v1011_v0 = vmov 0.0   ;;  %vm1012_vm0 = vmmov 0   ;;  %v668_v1 = vld [vmem:[#allocation5] sm:$0xff]   ;;  %v669_v2 = vld [vmem:[#allocation5 + $0x8] sm:$0xff]   ;;  %v493_v45 = vlaneseq }
  0xca   :  { %613 = vmatprep.subr.bf16.mxu0 %v1011_v0  ;;  %621 = vmatprep.mubr.msk.bf16.mxu0 %vm1012_vm0, %v1011_v0  ;;  %v670_v3 = vld [vmem:[#allocation5 + $0x10] sm:$0xff]   ;;  %v671_v4 = vld [vmem:[#allocation5 + $0x18] sm:$0xff]   ;;  %vm219_vm1 = vcmask 523264   ;;  %v672_v7 = vld [vmem:[#allocation8] sm:$0xff]   ;;  %vm296_vm2 = vcmask 261120   ;;  %vm513_vm3 = vcmask 125952  }
  0xcb   :  { %625 = vmatprep.subr.bf16.mxu1 %v1011_v0  ;;  %629 = vmatprep.mubr.msk.bf16.mxu1 %vm1012_vm0, %v1011_v0  ;;  %v178_v5 = vld [vmem:[#allocation2] sm:$0xf]  ;;  %v673_v8 = vld [vmem:[#allocation8 + $0x8] sm:$0xff]   ;;  %v579_v9 = vld [vmem:[#allocation7] ss:$0 sm:$0xff]  ;;  %v494_v46 = vshrl.u32 %v493_v45, 7 }
  0xcc   :  { %614 = vmatpush3.bf16.msra.mxu0 %v668_v1  ;;  %v179_v6 = vpack.c.bf16 %v178_v5, %v178_v5  ;;  %626 = vmatpush3.bf16.msra.mxu1 %v672_v7  ;;  %v674_v25 = vld [vmem:[#allocation14] sm:$0xff]   ;;  %v675_v26 = vld [vmem:[#allocation11] sm:$0xff]   ;;  %v677_v28 = vld [vmem:[#allocation11 + $0x8] sm:$0xff]   ;;  %vm519_vm4 = vcmask 3072   ;;  %s1013_s10 = smov [#allocation20]  }
  0xcd   :  { %615 = vmatprep.subr.bf16.mxu0 %v1011_v0  ;;  %627 = vmatprep.subr.bf16.mxu1 %v1011_v0  ;;  %v676_v27 = vld [vmem:[#allocation14 + $0x8] sm:$0xff]   ;;  %v495_v47 = vsub.s32 0, %v494_v46  ;;  %v593_v48 = vld [vmem:[#allocation16] ss:$0 sm:$0xff]  ;;  %v482_v49 = vld [vmem:[#allocation19] sm:$0x1] }
  0xce   :  { %v585_v29 = vld [vmem:[#allocation10] ss:$0 sm:$0xff]  ;;  %v589_v50 = vld [vmem:[#allocation13] ss:$0 sm:$0xff]  ;;  %v597_v1 = vld [vmem:[#allocation17] ss:$0 sm:$0xff] }
  0xcf   :  { %v496_v56 = vrot.slane %v482_v49, %v495_v47  ;;  %s551_s4 = sshll.u32 %s1013_s10, 4  ;;  %s552_s4 = int_to_ptr.vmem [resolvable:$true] %s551_s4 }
  0xd0   :  { %616 = vmatpush3.bf16.msra.mxu0 %v669_v2  ;;  %628 = vmatpush3.bf16.msra.mxu1 %v673_v8  ;;  %s938_s14 = scalar_lea.vmem %s552_s4, 64  ;;  %p943_p5 = scmp.lt.s32.totalorder %s552_s4, %s552_s4 }
  0xd1   :  { %617 = vmatprep.subr.bf16.mxu0 %v1011_v0  ;;  %633 = vmatprep.subr.bf16.mxu1 %v1011_v0  ;;  %p939_p4 = scmp.ne.s32.totalorder %s552_s4, %s938_s14  ;;  %p944_p6 = scmp.lt.s32.totalorder %s938_s14, %s938_s14 }
  0xd3   :  { %p945_p7 = por %p944_p6, %p943_p5 }
  0xd4   :  { %618 = vmatpush3.bf16.msra.mxu0 %v670_v3 }
  0xd5   :  { %619 = vmatprep.subr.bf16.mxu0 %v1011_v0  ;;  %p946_p8 = pnand %p945_p7, %p939_p4 }
  0xd8   :  { %620 = vmatpush3.bf16.msra.mxu0 %v671_v4 }
  0xd9   :  { %641 = vmatprep.subr.bf16.mxu0 %v1011_v0 }
  0xdb   :  { %622 = vmatmul.mubr.msk.bf16.vlgmr.msra.gmra.mrb[0].mxu0 %vm219_vm1, %v179_v6 }
  0xdc   :  { %645 = vmatprep.mubr.msk.bf16.mxu0 %vm1012_vm0, %v1011_v0  ;;  %642 = vmatpush3.bf16.msra.mxu0 %v674_v25 }
  0xdd   :  { %643 = vmatprep.subr.bf16.mxu0 %v1011_v0 }
  0xe0   :  { %644 = vmatpush3.bf16.msra.mxu0 %v676_v27 }
 0x1ae   :  { %v257_v10 = vpop.f32.mrb[0].mxu0 }
 0x1af   :  { %v258_v11 = vadd.f32 %v579_v9, %v257_v10  ;;  %v623_v12 = vpop.f32.mrb[1].mxu0 }
 0x1b0   :  { %v260_v13 = vpop.f32.mrb[2].mxu0 }
 0x1b1   :  { %v263_v14 = vand.u32 2147483647, %v258_v11  ;;  %v624_v15 = vpop.f32.mrb[3].mxu0  ;;  %v270_v22 = vmax.f32 %v258_v11, 0.0 }
 0x1b3   :  { %v264_v16 = vsub.f32 0.0, %v263_v14 }
 0x1b5   :  { %v265_v17 = vmul.f32 1.442695, %v264_v16 }
 0x1b7   :  { %678 = vpow2.f32 %v265_v17 }
 0x1c1   :  { %v679_v18 = vpop.eup %678 }
 0x1c2   :  { %v267_v19 = vadd.f32 1.0, %v679_v18 }
 0x1c4   :  { %680 = vlog2.f32 %v267_v19 }
 0x1ce   :  { %v681_v20 = vpop.eup %680 }
 0x1cf   :  { %v269_v21 = vmul.f32 0.6931472, %v681_v20 }
 0x1d1   :  { %v271_v23 = vadd.f32 %v270_v22, %v269_v21 }
 0x1d3   :  { %v272_v24 = vpack.c.bf16 %v271_v23, %v271_v23 }
 0x1d5   :  { %630 = vmatmul.mubr.msk.bf16.vlgmr.msra.gmra.mrb[0].mxu1 %vm296_vm2, %v272_v24 }
 0x1d6   :  { %637 = vmatprep.mubr.msk.bf16.mxu1 %vm1012_vm0, %v1011_v0  ;;  %634 = vmatpush3.bf16.msra.mxu1 %v675_v26 }
 0x1d7   :  { %635 = vmatprep.subr.bf16.mxu1 %v1011_v0 }
 0x1da   :  { %636 = vmatpush3.bf16.msra.mxu1 %v677_v28 }
 0x2a8   :  { %v334_v30 = vpop.f32.mrb[0].mxu1 }
 0x2a9   :  { %v335_v31 = vadd.f32 %v585_v29, %v334_v30  ;;  %v631_v32 = vpop.f32.mrb[1].mxu1 }
 0x2aa   :  { %v337_v33 = vpop.f32.mrb[2].mxu1 }
 0x2ab   :  { %v340_v34 = vand.u32 2147483647, %v335_v31  ;;  %v632_v35 = vpop.f32.mrb[3].mxu1  ;;  %v347_v42 = vmax.f32 %v335_v31, 0.0 }
 0x2ad   :  { %v341_v36 = vsub.f32 0.0, %v340_v34 }
 0x2af   :  { %v342_v37 = vmul.f32 1.442695, %v341_v36 }
 0x2b1   :  { %682 = vpow2.f32 %v342_v37 }
 0x2bb   :  { %v683_v38 = vpop.eup %682 }
 0x2bc   :  { %v344_v39 = vadd.f32 1.0, %v683_v38 }
 0x2be   :  { %684 = vlog2.f32 %v344_v39 }
 0x2bf   :  { %686 = vlog2.f32 %v482_v49 }
 0x2c0   :  { %688 = vrcp.f32 %v496_v56 }
 0x2c8   :  { %v685_v40 = vpop.eup %684 }
 0x2c9   :  { %v346_v41 = vmul.f32 0.6931472, %v685_v40  ;;  %v687_v3 = vpop.eup %686 }
 0x2ca   :  { %v504_v5 = vmul.f32 0.6931472, %v687_v3  ;;  %v689_v6 = vpop.eup %688 }
 0x2cb   :  { %v348_v43 = vadd.f32 %v347_v42, %v346_v41 }
 0x2cc   :  { %v509_v10 = vrot.slane %v504_v5, %v495_v47 }
 0x2cd   :  { %v349_v44 = vpack.c.bf16 %v348_v43, %v348_v43 }
 0x2cf   :  { %638 = vmatmul.mubr.msk.bf16.vlgmr.msra.gmra.mrb[4].mxu1 %vm296_vm2, %v349_v44  ;;  %646 = vmatmul.mubr.msk.bf16.vlgmr.msra.gmra.mrb[4].mxu0 %vm296_vm2, %v349_v44 }
 0x3a2   :  { %v410_v51 = vpop.f32.mrb[4].mxu1  ;;  %v474_v52 = vpop.f32.mrb[4].mxu0 }
 0x3a3   :  { %v475_v53 = vadd.f32 %v593_v48, %v474_v52  ;;  %v639_v54 = vpop.f32.mrb[5].mxu1  ;;  %v647_v55 = vpop.f32.mrb[5].mxu0  ;;  %v411_v57 = vadd.f32 %v589_v50, %v410_v51 }
 0x3a4   :  { %v413_v58 = vpop.f32.mrb[6].mxu1  ;;  %v477_v59 = vpop.f32.mrb[6].mxu0 }
 0x3a5   :  { %v480_v60 = vmul.f32 0.999995, %v475_v53  ;;  %v640_v61 = vpop.f32.mrb[7].mxu1  ;;  %v648_v62 = vpop.f32.mrb[7].mxu0  ;;  %v416_v0 = vmul.f32 0.999995, %v411_v57 }
 0x3a7   :  { %v483_v63 = vmul.f32 1.442695, %v480_v60  ;;  %v491_v2 = vsub.f32 %v416_v0, %v597_v1  ;;  %v533_v15 = vsel %vm513_vm3, %v416_v0, -inf }
 0x3a9   :  { %690 = vpow2.f32 %v483_v63  ;;  %v500_v4 = vmul.f32 %v491_v2, %v491_v2 }
 0x3ab   :  { %v501_v9 = vmul.f32 %v689_v6, %v500_v4 }
 0x3b3   :  { %v691_v7 = vpop.eup %690 }
 0x3b4   :  { %v499_v8 = vmul.f32 %v691_v7, %v689_v6 }
 0x3b6   :  { %v502_v11 = vadd.f32 %v501_v9, %v499_v8 }
 0x3b8   :  { %v511_v12 = vadd.f32 %v509_v10, %v502_v11 }
 0x3ba   :  { %v512_v13 = vsub.f32 %v511_v12, %v480_v60 }
 0x3bc   :  { %v514_v14 = vsel %vm513_vm3, %v512_v13, 0.0 }
 0x3bd   :  { %515 = vadd.xlane.f32.xlu0 %v514_v14 }
 0x3c1   :  { %534 = vmax.xlane.f32.xlu0 %v533_v15 }
 0x44a   :  { %v516_v16 = vpop.xlane.xlu0 %515 }
 0x44b   :  { %v598_v17 = vadd.f32 -16.0, %v516_v16 }
 0x44d   :  { %v518_v18 = vmul.f32 0.5, %v598_v17 }
 0x44e   :  { %v535_v19 = vpop.xlane.xlu0 %534 }
 0x44f   :  { %v536_v20 = vsub.f32 %v416_v0, %v535_v19  ;;  %v520_v21 = vsel %vm519_vm4, %v518_v18, 0.0 }
 0x450   :  { %521 = vadd.xlane.f32.xlu1 %v520_v21 }
 0x451   :  { %v537_v22 = vmul.f32 1.442695, %v536_v20 }
 0x453   :  { %692 = vpow2.f32 %v537_v22 }
 0x45d   :  { %v693_v23 = vpop.eup %692 }
 0x45e   :  { %v539_v24 = vsel %vm513_vm3, %v693_v23, 0.0 }
 0x45f   :  { %540 = vadd.xlane.f32.xlu1 %v539_v24 }
 0x4dd   :  { %v522_v25 = vpop.xlane.xlu1 %521 }
 0x4de   :  { %v523_v26 = vrot.slane %v522_v25, 4 }
 0x4e0   :  { %v524_v27 = vadd.f32 %v523_v26, %v522_v25 }
 0x4e2   :  { %v525_v28 = vrot.slane %v524_v27, 2 }
 0x4e4   :  { %v526_v29 = vadd.f32 %v525_v28, %v524_v27 }
 0x4e6   :  { %v527_v30 = vrot.slane %v526_v29, 1 }
 0x4e8   :  { %v528_v31 = vadd.f32 %v527_v30, %v526_v29 }
 0x4ea   :  { %649 = vpush %v528_v31 }
 0x4ec   :  { %v541_v32 = vpop.xlane.xlu1 %540 }
 0x4ed   :  { %694 = vrcp.f32 %v541_v32 }
 0x4f7   :  { %v695_v33 = vpop.eup %694 }
 0x4f8   :  { %v543_v34 = vmul.f32 %v695_v33, %v693_v23 }
 0x4fa   :  { %544 = vst.msk [vmem:[#allocation20] sm:$0xf] %vm513_vm3, %v543_v34 }
 0x4fb   :  { %949 = shalt.err (!%p946_p8)
}
 0x4fc   :  { %s950_s15 = scalar_lea.hbm %s1270_s11, 64 }
 0x4fd   :  { %p951_p9 = scmp.ne.s32.totalorder %s1270_s11, %s950_s15  ;;  %p954_p10 = scmp.lt.u32.totalorder %s950_s15, %s1270_s11 }
 0x4ff   :  { %p956_p11 = pnand %p954_p10, %p951_p9 }
 0x501   :  { %959 = shalt.err (!%p956_p11)
}
 0x502   :  { %554 = dma.vmem_to_hbm [thread:$0]  %s552_s4, 64, %s1270_s11, [#allocation4]  }
 0x503   :  { %s1014_s28 = smov [#allocation21]  }
 0x504   :  { %s561_s2 = sshll.u32 %s1014_s28, 4  ;;  %s562_s2 = int_to_ptr.vmem [resolvable:$true] %s561_s2 }
 0x505   :  { %s960_s16 = scalar_lea.vmem %s562_s2, 128  ;;  %p965_p13 = scmp.lt.s32.totalorder %s562_s2, %s562_s2 }
 0x506   :  { %p961_p12 = scmp.ne.s32.totalorder %s562_s2, %s960_s16  ;;  %p966_p0 = scmp.lt.s32.totalorder %s960_s16, %s960_s16 }
 0x508   :  { %p967_p1 = por %p966_p0, %p965_p13 }
 0x50a   :  { %p968_p2 = pnand %p967_p1, %p961_p12 }
 0x51b   :  { %s650_s6 = spop %649 }
 0x51c   :  { %v530_v35 = vstv %s650_s6 }
 0x51d   :  { %532 = vst [vmem:[#allocation21] sm:$0xff] %v530_v35 }
 0x51e   :  { %971 = shalt.err (!%p968_p2)
}
 0x51f   :  { %s972_s24 = scalar_lea.hbm %s1271_s12, 128 }
 0x520   :  { %p973_p3 = scmp.ne.s32.totalorder %s1271_s12, %s972_s24  ;;  %p976_p4 = scmp.lt.u32.totalorder %s972_s24, %s1271_s12 }
 0x522   :  { %p978_p5 = pnand %p976_p4, %p973_p3 }
 0x524   :  { %981 = shalt.err (!%p978_p5)
}
 0x525   :  { %564 = dma.vmem_to_hbm [thread:$0]  %s562_s2, 128, %s1271_s12, [#allocation22]  }
 0x526   :  { %994 = dma.done.wait [#allocation4], 64  }
 0x527   :  { %995 = vsyncadd [#allocation4], 4294967232 }
 0x528   :  { %996 = dma.done.wait [#allocation22], 128  }
 0x529   :  { %997 = vsyncadd [#allocation22], 4294967168 }
 0x52a   :  { %571 = vsyncpa [#allocation3], 1 }
 0x52b   :  { %572 = vsyncpa [#allocation6], 1 }
 0x52c   :  { %573 = vsyncpa [#allocation9], 1 }
 0x52d   :  { %574 = vsyncpa [#allocation12], 1 }
 0x52e   :  { %575 = vsyncpa [#allocation15], 1 }
 0x52f   :  { %576 = vsyncpa [#allocation18], 1 }
 0x530   :  { %577 = vsyncpa [#allocation4], 1 }
 0x531   :  { %578 = vsyncpa [#allocation22], 1 }

// kernel: _lambda_.5
= control target key start
LH: loop header
LB: loop body
LE: loop exit
PB: predicated region body
PF: predicated region fallthrough
CT: control target
= control target key end

     0   :  { %10 = vsyncpa [#allocation3], 0  ;;  %s499_s0 = inlined_call_operand.hbm [shape: f32[16,32], index: 0, kind: input, shape index: {}]   ;;  %s500_s1 = inlined_call_operand.hbm [shape: f32[32,64], index: 1, kind: input, shape index: {}]   ;;  %s501_s2 = inlined_call_operand.hbm [shape: f32[16,64], index: 2, kind: output, shape index: {0}]   ;;  %s502_s3 = inlined_call_operand.hbm [shape: f32[16,64], index: 3, kind: output, shape index: {1}]   ;;  %s503_s4 = inlined_call_operand.hbm [shape: f32[16,64], index: 4, kind: output, shape index: {2}]  }
   0x1   :  { %11 = vsyncpa [#allocation6], 0 }
   0x2   :  { %12 = vsyncpa [#allocation4], 0 }
   0x3   :  { %13 = vsyncpa [#allocation9], 0  ;;  %s373_s15 = smov [#allocation2]   ;;  %s255_s19 = scalar_lea.hbm %s499_s0, 256 }
   0x4   :  { %s19_s16 = sshll.u32 %s373_s15, 4  ;;  %p256_p0 = scmp.ne.s32.totalorder %s499_s0, %s255_s19  ;;  %s20_s16 = int_to_ptr.vmem [resolvable:$true] %s19_s16 }
   0x5   :  { %p259_p1 = scmp.lt.u32.totalorder %s255_s19, %s499_s0 }
   0x7   :  { %p261_p2 = pnand %p259_p1, %p256_p0 }
   0x9   :  { %264 = shalt.err (!%p261_p2)
}
   0xa   :  { %s265_s24 = scalar_lea.vmem %s20_s16, 256  ;;  %p270_p4 = scmp.lt.s32.totalorder %s20_s16, %s20_s16 }
   0xb   :  { %p266_p3 = scmp.ne.s32.totalorder %s20_s16, %s265_s24  ;;  %p271_p5 = scmp.lt.s32.totalorder %s265_s24, %s265_s24 }
   0xd   :  { %p272_p6 = por %p271_p5, %p270_p4 }
   0xf   :  { %p273_p7 = pnand %p272_p6, %p266_p3 }
  0x11   :  { %276 = shalt.err (!%p273_p7)
}
  0x12   :  { %s374_s25 = smov 128   ;;  %s375_s26 = smov 8  }
  0x13   :  { %25 = dma.hbm_to_vmem [thread:$0]  %s499_s0, 256, %s20_s16, [#allocation3], %s374_s25, %s374_s25, %s375_s26  }
  0x14   :  { %s376_s29 = smov [#allocation5]   ;;  %s277_s7 = scalar_lea.hbm %s500_s1, 512 }
  0x15   :  { %s31_s30 = sshll.u32 %s376_s29, 4  ;;  %p278_p8 = scmp.ne.s32.totalorder %s500_s1, %s277_s7  ;;  %s32_s30 = int_to_ptr.vmem [resolvable:$true] %s31_s30 }
  0x16   :  { %p281_p9 = scmp.lt.u32.totalorder %s277_s7, %s500_s1 }
  0x18   :  { %p283_p10 = pnand %p281_p9, %p278_p8 }
  0x1a   :  { %286 = shalt.err (!%p283_p10)
}
  0x1b   :  { %s287_s12 = scalar_lea.vmem %s32_s30, 512  ;;  %p292_p12 = scmp.lt.s32.totalorder %s32_s30, %s32_s30 }
  0x1c   :  { %p288_p11 = scmp.ne.s32.totalorder %s32_s30, %s287_s12  ;;  %p293_p13 = scmp.lt.s32.totalorder %s287_s12, %s287_s12 }
  0x1e   :  { %p294_p0 = por %p293_p13, %p292_p12 }
  0x20   :  { %p295_p1 = pnand %p294_p0, %p288_p11 }
  0x22   :  { %298 = shalt.err (!%p295_p1)
}
  0x23   :  { %37 = dma.hbm_to_vmem [thread:$0]  %s500_s1, 512, %s32_s30, [#allocation6], %s374_s25, %s374_s25, %s375_s26  }
  0x24   :  { %365 = dma.done.wait [#allocation3], 256  }
  0x25   :  { %366 = vsyncadd [#allocation3], 4294967040 }
  0x26   :  { %367 = dma.done.wait [#allocation6], 512  }
  0x27   :  { %368 = vsyncadd [#allocation6], 4294966784  ;;  %v377_v0 = vmov 0.0   ;;  %vm378_vm0 = vmmov 0   ;;  %v47_v1 = vld [vmem:[#allocation5] sm:$0xff]  ;;  %v48_v2 = vld [vmem:[#allocation5 + $0x8] sm:$0xff] }
  0x28   :  { %228 = vmatprep.subr.bf16.mxu0 %v377_v0  ;;  %232 = vmatprep.mubr.msk.bf16.mxu0 %vm378_vm0, %v377_v0  ;;  %vm64_vm1 = vcmask 523264   ;;  %v49_v3 = vld [vmem:[#allocation5 + $0x10] sm:$0xff]  ;;  %v60_v4 = vmul.f32 %v47_v1, %v47_v1  ;;  %v61_v5 = vmul.f32 %v48_v2, %v48_v2  ;;  %v81_v6 = vpack.c.bf16 %v48_v2, %v47_v1  ;;  %v50_v7 = vld [vmem:[#allocation5 + $0x18] sm:$0xff]  ;;  %s379_s1 = smov [#allocation8]  }
  0x29   :  { %v62_v8 = vmul.f32 %v49_v3, %v49_v3  ;;  %v45_v9 = vld [vmem:[#allocation2] sm:$0xff]  ;;  %v63_v10 = vmul.f32 %v50_v7, %v50_v7  ;;  %v82_v11 = vpack.c.bf16 %v50_v7, %v49_v3  ;;  %v46_v12 = vld [vmem:[#allocation2 + $0x8] sm:$0xff]  ;;  %vm53_vm2 = vcmask 261120   ;;  %s192_s14 = sshll.u32 %s379_s1, 4  ;;  %s193_s14 = int_to_ptr.vmem [resolvable:$true] %s192_s14 }
  0x2a   :  { %v51_v13 = vmul.f32 %v45_v9, %v45_v9  ;;  %v65_v14 = vsel %vm64_vm1, %v60_v4, 0.0  ;;  %v66_v15 = vsel %vm64_vm1, %v61_v5, 0.0  ;;  %229 = vmatpush3.bf16.msra.mxu0 %v81_v6  ;;  %v52_v17 = vmul.f32 %v46_v12, %v46_v12  ;;  %s299_s15 = scalar_lea.vmem %s193_s14, 256  ;;  %p304_p3 = scmp.lt.s32.totalorder %s193_s14, %s193_s14 }
  0x2b   :  { %v68_v16 = vsel %vm64_vm1, %v62_v8, 0.0  ;;  %v67_v18 = vadd.f32 %v66_v15, %v65_v14  ;;  %230 = vmatprep.subr.bf16.mxu0 %v377_v0  ;;  %v70_v20 = vsel %vm64_vm1, %v63_v10, 0.0  ;;  %v80_v22 = vpack.c.bf16 %v46_v12, %v45_v9  ;;  %p300_p2 = scmp.ne.s32.totalorder %s193_s14, %s299_s15  ;;  %p305_p4 = scmp.lt.s32.totalorder %s299_s15, %s299_s15 }
  0x2c   :  { %v54_v19 = vsel %vm53_vm2, %v51_v13, 0.0  ;;  %v57_v23 = vsel %vm53_vm2, %v52_v17, 0.0 }
  0x2d   :  { %55 = vadd.xlane.f32.xlu0 %v54_v19  ;;  %v69_v21 = vadd.f32 %v68_v16, %v67_v18  ;;  %p306_p5 = por %p305_p4, %p304_p3 }
  0x2e   :  { %231 = vmatpush3.bf16.msra.mxu0 %v82_v11 }
  0x2f   :  { %v71_v24 = vadd.f32 %v70_v20, %v69_v21  ;;  %p307_p6 = pnand %p306_p5, %p300_p2 }
  0x31   :  { %58 = vadd.xlane.f32.xlu0 %v57_v23  ;;  %233 = vmatmul.mubr.msk.bf16.vlgmr.msra.gmra.mrb[0].mxu0 %vm53_vm2, %v80_v22  ;;  %v72_v25 = vrot.slane %v71_v24, 4 }
  0x33   :  { %v73_v26 = vadd.f32 %v72_v25, %v71_v24 }
  0x35   :  { %v74_v27 = vrot.slane %v73_v26, 2 }
  0x37   :  { %v75_v28 = vadd.f32 %v74_v27, %v73_v26 }
  0x39   :  { %v76_v30 = vrot.slane %v75_v28, 1 }
  0x3b   :  { %v77_v31 = vadd.f32 %v76_v30, %v75_v28 }
  0xba   :  { %v56_v29 = vpop.xlane.xlu0 %55 }
  0xbb   :  { %v78_v34 = vadd.f32 %v77_v31, %v56_v29 }
  0xbe   :  { %v59_v32 = vpop.xlane.xlu0 %58 }
  0xbf   :  { %v79_v37 = vadd.f32 %v77_v31, %v59_v32 }
 0x104   :  { %v120_v33 = vpop.f32.mrb[0].mxu0 }
 0x105   :  { %v127_v35 = vmul.f32 2.0, %v120_v33  ;;  %v234_v36 = vpop.f32.mrb[1].mxu0 }
 0x106   :  { %v123_v38 = vpop.f32.mrb[2].mxu0 }
 0x107   :  { %v129_v39 = vsub.f32 %v78_v34, %v127_v35  ;;  %v128_v40 = vmul.f32 2.0, %v123_v38  ;;  %v235_v41 = vpop.f32.mrb[3].mxu0 }
 0x109   :  { %v131_v42 = vsub.f32 0.0, %v129_v39  ;;  %165 = vst.msk [vmem:[#allocation8] sm:$0xff] %vm64_vm1, %v129_v39  ;;  %v130_v43 = vsub.f32 %v79_v37, %v128_v40 }
 0x10b   :  { %v134_v44 = vmul.f32 5.0, %v131_v42  ;;  %v167_v45 = vmul.f32 20.0, %v131_v42  ;;  %v132_v46 = vsub.f32 0.0, %v130_v43  ;;  %166 = vst.msk [vmem:[#allocation8 + $0x8] sm:$0xff] %vm64_vm1, %v130_v43 }
 0x10c   :  { %310 = shalt.err (!%p307_p6)
}
 0x10d   :  { %s311_s18 = scalar_lea.hbm %s502_s3, 256 }
 0x10e   :  { %p312_p7 = scmp.ne.s32.totalorder %s502_s3, %s311_s18  ;;  %p315_p8 = scmp.lt.u32.totalorder %s311_s18, %s502_s3 }
 0x110   :  { %p317_p9 = pnand %p315_p8, %p312_p7 }
 0x112   :  { %320 = shalt.err (!%p317_p9)
}
 0x113   :  { %198 = dma.vmem_to_hbm [thread:$0]  %s193_s14, 256, %s502_s3, [#allocation9], %s374_s25, %s374_s25, %s375_s26   ;;  %v169_v47 = vmul.f32 1.442695, %v167_v45  ;;  %v135_v48 = vmul.f32 5.0, %v132_v46  ;;  %v168_v49 = vmul.f32 20.0, %v132_v46 }
 0x114   :  { %v136_v50 = vsel %vm64_vm1, %v134_v44, -inf  ;;  %s380_s27 = smov [#allocation10]  }
 0x115   :  { %245 = vpow2.f32 %v169_v47  ;;  %v137_v51 = vsel %vm64_vm1, %v135_v48, -inf  ;;  %v171_v52 = vmul.f32 1.442695, %v168_v49  ;;  %s204_s28 = sshll.u32 %s380_s27, 4  ;;  %s205_s28 = int_to_ptr.vmem [resolvable:$true] %s204_s28 }
 0x116   :  { %v138_v53 = vmax.f32 %v136_v50, %v137_v51  ;;  %s321_s3 = scalar_lea.vmem %s205_s28, 256  ;;  %p326_p11 = scmp.lt.s32.totalorder %s205_s28, %s205_s28 }
 0x117   :  { %247 = vpow2.f32 %v171_v52  ;;  %p322_p10 = scmp.ne.s32.totalorder %s205_s28, %s321_s3  ;;  %p327_p12 = scmp.lt.s32.totalorder %s321_s3, %s321_s3 }
 0x118   :  { %v139_v54 = vrot.slane %v138_v53, 4 }
 0x119   :  { %p328_p13 = por %p327_p12, %p326_p11 }
 0x11a   :  { %v140_v55 = vmax.f32 %v138_v53, %v139_v54 }
 0x11b   :  { %p329_p0 = pnand %p328_p13, %p322_p10 }
 0x11c   :  { %v141_v56 = vrot.slane %v140_v55, 2 }
 0x11e   :  { %v142_v57 = vmax.f32 %v140_v55, %v141_v56 }
 0x11f   :  { %v246_v58 = vpop.eup %245 }
 0x120   :  { %173 = vst.msk [vmem:[#allocation10] sm:$0xff] %vm64_vm1, %v246_v58  ;;  %v143_v59 = vrot.slane %v142_v57, 1 }
 0x121   :  { %v248_v60 = vpop.eup %247 }
 0x122   :  { %v144_v61 = vmax.f32 %v142_v57, %v143_v59  ;;  %174 = vst.msk [vmem:[#allocation10 + $0x8] sm:$0xff] %vm64_vm1, %v248_v60 }
 0x123   :  { %332 = shalt.err (!%p329_p0)
}
 0x124   :  { %s333_s5 = scalar_lea.hbm %s503_s4, 256 }
 0x125   :  { %p334_p1 = scmp.ne.s32.totalorder %s503_s4, %s333_s5  ;;  %p337_p2 = scmp.lt.u32.totalorder %s333_s5, %s503_s4 }
 0x127   :  { %p339_p3 = pnand %p337_p2, %p334_p1 }
 0x129   :  { %342 = shalt.err (!%p339_p3)
}
 0x12a   :  { %210 = dma.vmem_to_hbm [thread:$0]  %s205_s28, 256, %s503_s4, [#allocation9], %s374_s25, %s374_s25, %s375_s26   ;;  %v145_v62 = vsub.f32 %v134_v44, %v144_v61  ;;  %v146_v63 = vsub.f32 %v135_v48, %v144_v61 }
 0x12b   :  { %s381_s4 = smov [#allocation7]  }
 0x12c   :  { %v147_v0 = vmul.f32 1.442695, %v145_v62  ;;  %v149_v1 = vmul.f32 1.442695, %v146_v63  ;;  %s180_s12 = sshll.u32 %s381_s4, 4  ;;  %s181_s12 = int_to_ptr.vmem [resolvable:$true] %s180_s12 }
 0x12d   :  { %s343_s0 = scalar_lea.vmem %s181_s12, 256  ;;  %p348_p5 = scmp.lt.s32.totalorder %s181_s12, %s181_s12 }
 0x12e   :  { %249 = vpow2.f32 %v147_v0  ;;  %p344_p4 = scmp.ne.s32.totalorder %s181_s12, %s343_s0  ;;  %p349_p6 = scmp.lt.s32.totalorder %s343_s0, %s343_s0 }
 0x12f   :  { %251 = vpow2.f32 %v149_v1 }
 0x130   :  { %p350_p7 = por %p349_p6, %p348_p5 }
 0x132   :  { %p351_p8 = pnand %p350_p7, %p344_p4 }
 0x138   :  { %v250_v2 = vpop.eup %249 }
 0x139   :  { %v252_v3 = vpop.eup %251  ;;  %v151_v4 = vsel %vm64_vm1, %v250_v2, 0.0 }
 0x13a   :  { %v152_v5 = vsel %vm64_vm1, %v252_v3, 0.0 }
 0x13b   :  { %v153_v6 = vadd.f32 %v152_v5, %v151_v4 }
 0x13d   :  { %v154_v7 = vrot.slane %v153_v6, 4 }
 0x13f   :  { %v155_v8 = vadd.f32 %v154_v7, %v153_v6 }
 0x141   :  { %v156_v9 = vrot.slane %v155_v8, 2 }
 0x143   :  { %v157_v10 = vadd.f32 %v156_v9, %v155_v8 }
 0x145   :  { %v158_v11 = vrot.slane %v157_v10, 1 }
 0x147   :  { %v159_v12 = vadd.f32 %v158_v11, %v157_v10 }
 0x149   :  { %253 = vrcp.f32 %v159_v12 }
 0x153   :  { %v254_v13 = vpop.eup %253 }
 0x154   :  { %v161_v14 = vmul.f32 %v254_v13, %v250_v2  ;;  %v162_v15 = vmul.f32 %v254_v13, %v252_v3 }
 0x156   :  { %163 = vst.msk [vmem:[#allocation7] sm:$0xff] %vm64_vm1, %v161_v14  ;;  %164 = vst.msk [vmem:[#allocation7 + $0x8] sm:$0xff] %vm64_vm1, %v162_v15 }
 0x157   :  { %354 = shalt.err (!%p351_p8)
}
 0x158   :  { %s355_s14 = scalar_lea.hbm %s501_s2, 256 }
 0x159   :  { %p356_p9 = scmp.ne.s32.totalorder %s501_s2, %s355_s14  ;;  %p359_p10 = scmp.lt.u32.totalorder %s355_s14, %s501_s2 }
 0x15b   :  { %p361_p11 = pnand %p359_p10, %p356_p9 }
 0x15d   :  { %364 = shalt.err (!%p361_p11)
}
 0x15e   :  { %186 = dma.vmem_to_hbm [thread:$0]  %s181_s12, 256, %s501_s2, [#allocation4], %s374_s25, %s374_s25, %s375_s26  }
 0x15f   :  { %369 = dma.done.wait [#allocation4], 256  }
 0x160   :  { %370 = vsyncadd [#allocation4], 4294967040 }
 0x161   :  { %371 = dma.done.wait [#allocation9], 512  }
 0x162   :  { %372 = vsyncadd [#allocation9], 4294966784 }
 0x163   :  { %220 = vsyncpa [#allocation3], 1 }
 0x164   :  { %221 = vsyncpa [#allocation6], 1 }
 0x165   :  { %222 = vsyncpa [#allocation4], 1 }
 0x166   :  { %223 = vsyncpa [#allocation9], 1 }

// kernel: body.6
= control target key start
LH: loop header
LB: loop body
LE: loop exit
PB: predicated region body
PF: predicated region fallthrough
CT: control target
= control target key end

     0   :  { %9 = vsyncpa [#allocation3], 0  ;;  %s321_s0 = inlined_call_operand.hbm [shape: f32[16,64], index: 0, kind: input, shape index: {}]   ;;  %s322_s1 = inlined_call_operand.hbm [shape: f32[16,1], index: 1, kind: input, shape index: {}]   ;;  %s323_s2 = inlined_call_operand.hbm [shape: f32[16,1], index: 2, kind: output, shape index: {0}]   ;;  %s324_s3 = inlined_call_operand.hbm [shape: f32[1,64], index: 3, kind: output, shape index: {1}]  }
   0x1   :  { %10 = vsyncpa [#allocation6], 0 }
   0x2   :  { %11 = vsyncpa [#allocation4], 0 }
   0x3   :  { %12 = vsyncpa [#allocation9], 0  ;;  %s233_s12 = smov [#allocation2]   ;;  %s137_s16 = scalar_lea.hbm %s321_s0, 256 }
   0x4   :  { %s18_s13 = sshll.u32 %s233_s12, 4  ;;  %p138_p0 = scmp.ne.s32.totalorder %s321_s0, %s137_s16  ;;  %s19_s13 = int_to_ptr.vmem [resolvable:$true] %s18_s13 }
   0x5   :  { %p141_p1 = scmp.lt.u32.totalorder %s137_s16, %s321_s0 }
   0x7   :  { %p143_p2 = pnand %p141_p1, %p138_p0 }
   0x9   :  { %146 = shalt.err (!%p143_p2)
}
   0xa   :  { %s147_s21 = scalar_lea.vmem %s19_s13, 256  ;;  %p152_p4 = scmp.lt.s32.totalorder %s19_s13, %s19_s13 }
   0xb   :  { %p148_p3 = scmp.ne.s32.totalorder %s19_s13, %s147_s21  ;;  %p153_p5 = scmp.lt.s32.totalorder %s147_s21, %s147_s21 }
   0xd   :  { %p154_p6 = por %p153_p5, %p152_p4 }
   0xf   :  { %p155_p7 = pnand %p154_p6, %p148_p3 }
  0x11   :  { %158 = shalt.err (!%p155_p7)
}
  0x12   :  { %s234_s22 = smov 128   ;;  %s235_s23 = smov 8  }
  0x13   :  { %24 = dma.hbm_to_vmem [thread:$0]  %s321_s0, 256, %s19_s13, [#allocation3], %s234_s22, %s234_s22, %s235_s23  }
  0x14   :  { %s236_s26 = smov [#allocation5]   ;;  %s159_s30 = scalar_lea.hbm %s322_s1, 256 }
  0x15   :  { %s30_s27 = sshll.u32 %s236_s26, 4  ;;  %p160_p8 = scmp.ne.s32.totalorder %s322_s1, %s159_s30  ;;  %s31_s27 = int_to_ptr.vmem [resolvable:$true] %s30_s27 }
  0x16   :  { %p163_p9 = scmp.lt.u32.totalorder %s159_s30, %s322_s1 }
  0x18   :  { %p165_p10 = pnand %p163_p9, %p160_p8 }
  0x1a   :  { %168 = shalt.err (!%p165_p10)
}
  0x1b   :  { %s169_s8 = scalar_lea.vmem %s31_s27, 256  ;;  %p174_p12 = scmp.lt.s32.totalorder %s31_s27, %s31_s27 }
  0x1c   :  { %p170_p11 = scmp.ne.s32.totalorder %s31_s27, %s169_s8  ;;  %p175_p13 = scmp.lt.s32.totalorder %s169_s8, %s169_s8 }
  0x1e   :  { %p176_p0 = por %p175_p13, %p174_p12 }
  0x20   :  { %p177_p1 = pnand %p176_p0, %p170_p11 }
  0x22   :  { %180 = shalt.err (!%p177_p1)
}
  0x23   :  { %36 = dma.hbm_to_vmem [thread:$0]  %s322_s1, 256, %s31_s27, [#allocation6], %s234_s22, %s234_s22, %s235_s23  }
  0x24   :  { %225 = dma.done.wait [#allocation3], 256  }
  0x25   :  { %226 = vsyncadd [#allocation3], 4294967040 }
  0x26   :  { %227 = dma.done.wait [#allocation6], 256  }
  0x27   :  { %228 = vsyncadd [#allocation6], 4294967040  ;;  %v237_v0 = vmov 0   ;;  %v45_v1 = vld [vmem:[#allocation5] sm:$0xff]  ;;  %v46_v2 = vld [vmem:[#allocation5 + $0x8] sm:$0xff]  ;;  %vm59_vm0 = vcmask 523264  }
  0x28   :  { %130 = vset.pattern.permute.xlu0 %v237_v0  ;;  %v43_v4 = vld [vmem:[#allocation2] sm:$0xff]  ;;  %v44_v5 = vld [vmem:[#allocation2 + $0x8] sm:$0xff]  ;;  %vm89_vm1 = vcmask 516096   ;;  %s238_s1 = smov [#allocation8]  }
  0x29   :  { %49 = vperm.xlu0 %130, %v45_v1   ;;  %s109_s10 = sshll.u32 %s238_s1, 4  ;;  %s110_s10 = int_to_ptr.vmem [resolvable:$true] %s109_s10 }
  0x2a   :  { %s181_s11 = scalar_lea.vmem %s110_s10, 16  ;;  %s185_s12 = scalar_lea.vmem %s110_s10, 32 }
  0x2b   :  { %p182_p2 = scmp.ne.s32.totalorder %s110_s10, %s181_s11  ;;  %p186_p3 = scmp.lt.s32.totalorder %s110_s10, %s110_s10 }
  0x2c   :  { %p187_p4 = scmp.lt.s32.totalorder %s185_s12, %s181_s11 }
  0x2d   :  { %54 = vperm.xlu0 %130, %v46_v2  }
  0x2e   :  { %p188_p5 = por %p187_p4, %p186_p3 }
  0x30   :  { %p189_p6 = pnand %p188_p5, %p182_p2 }
  0xa8   :  { %v50_v3 = vpop.permute.xlu0 %49 }
  0xa9   :  { %v57_v6 = vmul.f32 %v50_v3, %v43_v4 }
  0xab   :  { %v60_v9 = vsel %vm59_vm0, %v57_v6, 0.0 }
  0xac   :  { %v55_v7 = vpop.permute.xlu0 %54 }
  0xad   :  { %v58_v8 = vmul.f32 %v55_v7, %v44_v5 }
  0xaf   :  { %v61_v10 = vsel %vm59_vm0, %v58_v8, 0.0 }
  0xb0   :  { %v62_v11 = vadd.f32 %v61_v10, %v60_v9 }
  0xb2   :  { %v63_v12 = vrot.slane %v62_v11, 4 }
  0xb4   :  { %v64_v13 = vadd.f32 %v63_v12, %v62_v11 }
  0xb6   :  { %v65_v14 = vrot.slane %v64_v13, 2 }
  0xb8   :  { %v66_v15 = vadd.f32 %v65_v14, %v64_v13 }
  0xba   :  { %v67_v16 = vrot.slane %v66_v15, 1 }
  0xbc   :  { %v68_v17 = vadd.f32 %v67_v16, %v66_v15 }
  0xbe   :  { %v69_v18 = vadd.f32 1e-16, %v68_v17 }
  0xc0   :  { %131 = vrcp.f32 %v69_v18 }
  0xca   :  { %v132_v19 = vpop.eup %131 }
  0xcb   :  { %v71_v20 = vmul.f32 0.015625, %v132_v19 }
  0xcd   :  { %v72_v21 = vmul.f32 %v71_v20, %v43_v4  ;;  %90 = vst.msk [vmem:[#allocation8] sm:$0x1] %vm89_vm1, %v71_v20  ;;  %v73_v23 = vmul.f32 %v71_v20, %v44_v5 }
  0xcf   :  { %v74_v22 = vsel %vm59_vm0, %v72_v21, 0.0  ;;  %v77_v24 = vsel %vm59_vm0, %v73_v23, 0.0 }
  0xd0   :  { %75 = vadd.xlane.f32.xlu1 %v74_v22 }
  0xd4   :  { %78 = vadd.xlane.f32.xlu1 %v77_v24 }
  0xd5   :  { %192 = shalt.err (!%p189_p6)
}
  0xd6   :  { %s193_s15 = scalar_lea.hbm %s324_s3, 16 }
  0xd7   :  { %p194_p7 = scmp.ne.s32.totalorder %s324_s3, %s193_s15  ;;  %p197_p8 = scmp.lt.u32.totalorder %s193_s15, %s324_s3 }
  0xd9   :  { %p199_p9 = pnand %p197_p8, %p194_p7 }
  0xdb   :  { %202 = shalt.err (!%p199_p9)
}
  0xdc   :  { %112 = dma.vmem_to_hbm [thread:$0]  %s110_s10, 16, %s324_s3, [#allocation9]   ;;  %vm86_vm2 = vcmask 7168  }
  0xdd   :  { %s239_s24 = smov [#allocation7]  }
  0xde   :  { %s96_s25 = sshll.u32 %s239_s24, 4  ;;  %s97_s25 = int_to_ptr.vmem [resolvable:$true] %s96_s25 }
  0xdf   :  { %s203_s26 = scalar_lea.vmem %s97_s25, 256  ;;  %p208_p11 = scmp.lt.s32.totalorder %s97_s25, %s97_s25 }
  0xe0   :  { %p204_p10 = scmp.ne.s32.totalorder %s97_s25, %s203_s26  ;;  %p209_p12 = scmp.lt.s32.totalorder %s203_s26, %s203_s26 }
  0xe2   :  { %p210_p13 = por %p209_p12, %p208_p11 }
  0xe4   :  { %p211_p0 = pnand %p210_p13, %p204_p10 }
 0x15d   :  { %v76_v25 = vpop.xlane.xlu1 %75 }
 0x15e   :  { %v80_v26 = vadd.f32 1e-16, %v76_v25 }
 0x160   :  { %133 = vrcp.f32 %v80_v26 }
 0x161   :  { %v79_v27 = vpop.xlane.xlu1 %78 }
 0x162   :  { %v81_v28 = vadd.f32 1e-16, %v79_v27 }
 0x164   :  { %135 = vrcp.f32 %v81_v28 }
 0x16a   :  { %v134_v29 = vpop.eup %133 }
 0x16b   :  { %v83_v30 = vmul.f32 0.0625, %v134_v29 }
 0x16d   :  { %87 = vst.msk [vmem:[#allocation7] sm:$0xff] %vm86_vm2, %v83_v30 }
 0x16e   :  { %v136_v31 = vpop.eup %135 }
 0x16f   :  { %v85_v32 = vmul.f32 0.0625, %v136_v31 }
 0x171   :  { %88 = vst.msk [vmem:[#allocation7 + $0x8] sm:$0xff] %vm86_vm2, %v85_v32 }
 0x172   :  { %214 = shalt.err (!%p211_p0)
}
 0x173   :  { %s215_s28 = scalar_lea.hbm %s323_s2, 256 }
 0x174   :  { %p216_p1 = scmp.ne.s32.totalorder %s323_s2, %s215_s28  ;;  %p219_p2 = scmp.lt.u32.totalorder %s215_s28, %s323_s2 }
 0x176   :  { %p221_p3 = pnand %p219_p2, %p216_p1 }
 0x178   :  { %224 = shalt.err (!%p221_p3)
}
 0x179   :  { %102 = dma.vmem_to_hbm [thread:$0]  %s97_s25, 256, %s323_s2, [#allocation4], %s234_s22, %s234_s22, %s235_s23  }
 0x17a   :  { %229 = dma.done.wait [#allocation4], 256  }
 0x17b   :  { %230 = vsyncadd [#allocation4], 4294967040 }
 0x17c   :  { %231 = dma.done.wait [#allocation9], 16  }
 0x17d   :  { %232 = vsyncadd [#allocation9], 4294967280 }
 0x17e   :  { %119 = vsyncpa [#allocation3], 1 }
 0x17f   :  { %120 = vsyncpa [#allocation6], 1 }
 0x180   :  { %121 = vsyncpa [#allocation4], 1 }
 0x181   :  { %122 = vsyncpa [#allocation9], 1 }

</bundles_post_ra>
